<compile_context>
chip_gen: v6e
topology: v6e:2x2x1
jax: 0.10.0
libtpu: 0.0.40
codegen_flags: <defaults>
</compile_context>

<pallas_src>
import functools

import jax
import jax.numpy as jnp
from jax import lax
from jax.experimental import pallas as pl
from jax.experimental.pallas import tpu as pltpu


def _rnn_fused_kernel(x_ref, wx_ref, wh_ref, b_ref, out_ref, act_ref, *,
                      num_layers, seq_len, batch, hidden, in_pad, unroll):
    """Fused multi-layer tanh-RNN forward.

    x_ref   : (seq_len, batch, in_pad)         padded input sequence
    wx_ref  : (num_layers, in_pad, hidden)     W_ih^T per layer (zero-padded rows)
    wh_ref  : (num_layers, hidden, hidden)     W_hh^T per layer
    b_ref   : (num_layers, 1, hidden)          b_ih + b_hh per layer
    out_ref : (seq_len, batch, hidden)
    act_ref : VMEM scratch (seq_len, batch, in_pad) — inter-layer activations
    """
    # Stage the whole input sequence into the activation slab once.
    act_ref[...] = x_ref[...]

    for layer in range(num_layers):          # static, unrolled layer loop
        # Weights / bias loaded once per layer, reused across all timesteps.
        w_x = wx_ref[layer]                  # (in_pad, hidden)
        w_h = wh_ref[layer]                  # (hidden, hidden)
        b = jnp.broadcast_to(b_ref[layer], (batch, hidden))  # hoisted broadcast

        def step(t, h, w_x=w_x, w_h=w_h, b=b):
            x_t = act_ref[t]                 # (batch, in_pad)
            pre = (
                jnp.dot(x_t, w_x, preferred_element_type=jnp.float32)
                + jnp.dot(h, w_h, preferred_element_type=jnp.float32)
                + b
            )
            h_new = jnp.tanh(pre)
            # Write this layer's output in place for the next layer to read.
            if in_pad == hidden:
                act_ref[t] = h_new
            else:
                act_ref[t, :, :hidden] = h_new  # extra cols hit zero weight rows
            return h_new

        lax.fori_loop(
            0, seq_len, step,
            jnp.zeros((batch, hidden), jnp.float32),
            unroll=unroll,
        )

    # Single coalesced store of the last layer's outputs.
    if in_pad == hidden:
        out_ref[...] = act_ref[...]
    else:
        out_ref[...] = act_ref[:, :, :hidden]


def rnn_forward_pallas(x, params, hidden_size):
    """Run the whole stacked RNN (all layers, all timesteps) in one kernel.

    x:      (seq_len, batch, input_size) float32
    params: list of (w_ih (H, in), w_hh (H, H), b_ih (H,), b_hh (H,))
    returns (seq_len, batch, hidden_size) float32
    """
    seq_len, batch, input_size = x.shape
    num_layers = len(params)
    in_pad = max(input_size, hidden_size)

    # Pad the input feature dim so every layer's "x" has the same width.
    if input_size < in_pad:
        x_in = jnp.pad(x, ((0, 0), (0, 0), (0, in_pad - input_size)))
    else:
        x_in = x

    # Stack per-layer weights: zero-pad W_ih^T rows up to in_pad so layer 0 and
    # the hidden->hidden layers share one shape (zero rows kill any padding).
    wx_list, wh_list, b_list = [], [], []
    for (w_ih, w_hh, b_ih, b_hh) in params:
        in_sz = w_ih.shape[1]
        w_ih_t = jnp.transpose(w_ih)                       # (in_sz, H)
        if in_sz < in_pad:
            w_ih_t = jnp.pad(w_ih_t, ((0, in_pad - in_sz), (0, 0)))
        wx_list.append(w_ih_t)
        wh_list.append(jnp.transpose(w_hh))                # (H, H)
        b_list.append((b_ih + b_hh).reshape(1, hidden_size))
    wx = jnp.stack(wx_list, axis=0)                        # (L, in_pad, H)
    wh = jnp.stack(wh_list, axis=0)                        # (L, H, H)
    b = jnp.stack(b_list, axis=0)                          # (L, 1, H)

    kernel = functools.partial(
        _rnn_fused_kernel,
        num_layers=num_layers,
        seq_len=seq_len,
        batch=batch,
        hidden=hidden_size,
        in_pad=in_pad,
        unroll=True if seq_len <= 32 else 8,
    )

    return pl.pallas_call(
        kernel,
        out_shape=jax.ShapeDtypeStruct((seq_len, batch, hidden_size), jnp.float32),
        in_specs=[
            pl.BlockSpec(memory_space=pltpu.MemorySpace.VMEM),  # x
            pl.BlockSpec(memory_space=pltpu.MemorySpace.VMEM),  # wx
            pl.BlockSpec(memory_space=pltpu.MemorySpace.VMEM),  # wh
            pl.BlockSpec(memory_space=pltpu.MemorySpace.VMEM),  # b
        ],
        out_specs=pl.BlockSpec(memory_space=pltpu.MemorySpace.VMEM),
        scratch_shapes=[pltpu.VMEM((seq_len, batch, in_pad), jnp.float32)],
    )(x_in, wx, wh, b)


@functools.partial(jax.jit, static_argnames=("hidden_size",))
def model_forward(x, params, hidden_size):
    """Full Model.forward: stacked RNN layers + out.view(-1, hidden_size)."""
    out = rnn_forward_pallas(x, params, hidden_size)  # (seq, batch, hidden)
    return out.reshape(-1, hidden_size)


def init_params(key, input_size, hidden_size, num_layers):
    """Deterministic init mirroring PyTorch's U(-1/sqrt(hidden), 1/sqrt(hidden))."""
    params = []
    bound = 1.0 / jnp.sqrt(jnp.float32(hidden_size))
    for layer in range(num_layers):
        in_sz = input_size if layer == 0 else hidden_size
        key, k1, k2, k3, k4 = jax.random.split(key, 5)
        w_ih = jax.random.uniform(k1, (hidden_size, in_sz), jnp.float32, -bound, bound)
        w_hh = jax.random.uniform(k2, (hidden_size, hidden_size), jnp.float32, -bound, bound)
        b_ih = jax.random.uniform(k3, (hidden_size,), jnp.float32, -bound, bound)
        b_hh = jax.random.uniform(k4, (hidden_size,), jnp.float32, -bound, bound)
        params.append((w_ih, w_hh, b_ih, b_hh))
    return params


def reference_forward(x, params, hidden_size):
    """Pure-JAX reference of the same recurrence (for a sanity check)."""
    layer_in = x
    for (w_ih, w_hh, b_ih, b_hh) in params:
        h = jnp.zeros((x.shape[1], hidden_size), jnp.float32)
        outs = []
        for t in range(x.shape[0]):
            h = jnp.tanh(layer_in[t] @ w_ih.T + b_ih + h @ w_hh.T + b_hh)
            outs.append(h)
        layer_in = jnp.stack(outs, axis=0)
    return layer_in.reshape(-1, hidden_size)


if __name__ == "__main__":
    # Small shapes consistent with the module's forward:
    seq_len = 8
    batch_size = 2
    input_size = 4
    hidden_size = 32
    num_layers = 2

    key = jax.random.PRNGKey(0)
    key, kx = jax.random.split(key)
    x = jax.random.normal(kx, (seq_len, batch_size, input_size), jnp.float32)

    params = init_params(key, input_size, hidden_size, num_layers)

    out = model_forward(x, params, hidden_size)
    out = jax.block_until_ready(out)

    # correctness check against pure-JAX reference
    ref = reference_forward(x, params, hidden_size)
    assert out.shape == (seq_len * batch_size, hidden_size), out.shape
    assert jnp.allclose(out, ref, atol=1e-5, rtol=1e-5), "mismatch vs reference"

    print("KERNEL_OK")
</pallas_src>

<mosaic_0001>
module attributes {stable_mosaic.version = 11 : i64} {
  func.func @_rnn_fused_kernel(%arg0: memref<8x2x32xf32, #tpu.memory_space<vmem>>, %arg1: memref<2x32x32xf32, #tpu.memory_space<vmem>>, %arg2: memref<2x32x32xf32, #tpu.memory_space<vmem>>, %arg3: memref<2x1x32xf32, #tpu.memory_space<vmem>>, %arg4: memref<8x2x32xf32, #tpu.memory_space<vmem>>, %arg5: memref<8x2x32xf32, #tpu.memory_space<vmem>>) attributes {dimension_semantics = [], scalar_prefetch = 0 : i64, scratch_operands = 1 : i64, tpu.core_type = #tpu.core_type<tc>} {
    %c0 = arith.constant 0 : index
    %c0_0 = arith.constant 0 : index
    %c0_1 = arith.constant 0 : index
    %0 = vector.load %arg0[%c0, %c0_0, %c0_1] : memref<8x2x32xf32, #tpu.memory_space<vmem>>, vector<8x2x32xf32>
    %c0_2 = arith.constant 0 : index
    %c0_3 = arith.constant 0 : index
    %c0_4 = arith.constant 0 : index
    %1 = vector.load %arg5[%c0_2, %c0_3, %c0_4] : memref<8x2x32xf32, #tpu.memory_space<vmem>>, vector<8x2x32xf32>
    tpu.vector_store %arg5[%c0_2, %c0_3, %c0_4], %0 {strides = array<i32>} : memref<8x2x32xf32, #tpu.memory_space<vmem>>, vector<8x2x32xf32>,
    %c0_5 = arith.constant 0 : index
    %c0_6 = arith.constant 0 : index
    %c0_7 = arith.constant 0 : index
    %2 = vector.load %arg1[%c0_5, %c0_6, %c0_7] : memref<2x32x32xf32, #tpu.memory_space<vmem>>, vector<1x32x32xf32>
    %3 = vector.shape_cast %2 : vector<1x32x32xf32> to vector<32x32xf32>
    %c0_8 = arith.constant 0 : index
    %c0_9 = arith.constant 0 : index
    %c0_10 = arith.constant 0 : index
    %4 = vector.load %arg2[%c0_8, %c0_9, %c0_10] : memref<2x32x32xf32, #tpu.memory_space<vmem>>, vector<1x32x32xf32>
    %5 = vector.shape_cast %4 : vector<1x32x32xf32> to vector<32x32xf32>
    %c0_11 = arith.constant 0 : index
    %c0_12 = arith.constant 0 : index
    %c0_13 = arith.constant 0 : index
    %6 = vector.load %arg3[%c0_11, %c0_12, %c0_13] : memref<2x1x32xf32, #tpu.memory_space<vmem>>, vector<1x1x32xf32>
    %7 = vector.shape_cast %6 : vector<1x1x32xf32> to vector<1x32xf32>
    %8 = vector.shape_cast %7 : vector<1x32xf32> to vector<1x32xf32>
    %9 = vector.broadcast %8 : vector<1x32xf32> to vector<2x32xf32>
    %cst = arith.constant 0.000000e+00 : f32
    %10 = vector.broadcast %cst : f32 to vector<2x32xf32>
    %c0_i32 = arith.constant 0 : i32
    %11 = arith.index_cast %c0_i32 : i32 to index
    %c0_14 = arith.constant 0 : index
    %c0_15 = arith.constant 0 : index
    %12 = vector.load %arg5[%11, %c0_14, %c0_15] : memref<8x2x32xf32, #tpu.memory_space<vmem>>, vector<1x2x32xf32>
    %13 = vector.shape_cast %12 : vector<1x2x32xf32> to vector<2x32xf32>
    %cst_16 = arith.constant dense<0.000000e+00> : vector<2x32xf32>
    %14 = tpu.matmul %13, %3, %cst_16 {dimension_numbers = #tpu.dot_dimension_numbers<[1], [0], [0], [1], [0, 0, 1, 1], [], []>} : vector<2x32xf32>, vector<32x32xf32>, vector<2x32xf32> -> vector<2x32xf32>
    %cst_17 = arith.constant dense<0.000000e+00> : vector<2x32xf32>
    %15 = tpu.matmul %10, %5, %cst_17 {dimension_numbers = #tpu.dot_dimension_numbers<[1], [0], [0], [1], [0, 0, 1, 1], [], []>} : vector<2x32xf32>, vector<32x32xf32>, vector<2x32xf32> -> vector<2x32xf32>
    %16 = arith.addf %14, %15 : vector<2x32xf32>
    %17 = arith.addf %16, %9 : vector<2x32xf32>
    %18 = math.tanh %17 : vector<2x32xf32>
    %19 = arith.index_cast %c0_i32 : i32 to index
    %c0_18 = arith.constant 0 : index
    %c0_19 = arith.constant 0 : index
    %20 = vector.load %arg5[%19, %c0_18, %c0_19] : memref<8x2x32xf32, #tpu.memory_space<vmem>>, vector<1x2x32xf32>
    %21 = vector.shape_cast %20 : vector<1x2x32xf32> to vector<2x32xf32>
    %22 = vector.shape_cast %18 : vector<2x32xf32> to vector<1x2x32xf32>
    tpu.vector_store %arg5[%19, %c0_18, %c0_19], %22 {strides = array<i32>} : memref<8x2x32xf32, #tpu.memory_space<vmem>>, vector<1x2x32xf32>,
    %c1_i32 = arith.constant 1 : i32
    %23 = arith.index_cast %c1_i32 : i32 to index
    %c0_20 = arith.constant 0 : index
    %c0_21 = arith.constant 0 : index
    %24 = vector.load %arg5[%23, %c0_20, %c0_21] : memref<8x2x32xf32, #tpu.memory_space<vmem>>, vector<1x2x32xf32>
    %25 = vector.shape_cast %24 : vector<1x2x32xf32> to vector<2x32xf32>
    %cst_22 = arith.constant dense<0.000000e+00> : vector<2x32xf32>
    %26 = tpu.matmul %25, %3, %cst_22 {dimension_numbers = #tpu.dot_dimension_numbers<[1], [0], [0], [1], [0, 0, 1, 1], [], []>} : vector<2x32xf32>, vector<32x32xf32>, vector<2x32xf32> -> vector<2x32xf32>
    %cst_23 = arith.constant dense<0.000000e+00> : vector<2x32xf32>
    %27 = tpu.matmul %18, %5, %cst_23 {dimension_numbers = #tpu.dot_dimension_numbers<[1], [0], [0], [1], [0, 0, 1, 1], [], []>} : vector<2x32xf32>, vector<32x32xf32>, vector<2x32xf32> -> vector<2x32xf32>
    %28 = arith.addf %26, %27 : vector<2x32xf32>
    %29 = arith.addf %28, %9 : vector<2x32xf32>
    %30 = math.tanh %29 : vector<2x32xf32>
    %31 = arith.index_cast %c1_i32 : i32 to index
    %c0_24 = arith.constant 0 : index
    %c0_25 = arith.constant 0 : index
    %32 = vector.load %arg5[%31, %c0_24, %c0_25] : memref<8x2x32xf32, #tpu.memory_space<vmem>>, vector<1x2x32xf32>
    %33 = vector.shape_cast %32 : vector<1x2x32xf32> to vector<2x32xf32>
    %34 = vector.shape_cast %30 : vector<2x32xf32> to vector<1x2x32xf32>
    tpu.vector_store %arg5[%31, %c0_24, %c0_25], %34 {strides = array<i32>} : memref<8x2x32xf32, #tpu.memory_space<vmem>>, vector<1x2x32xf32>,
    %c2_i32 = arith.constant 2 : i32
    %35 = arith.index_cast %c2_i32 : i32 to index
    %c0_26 = arith.constant 0 : index
    %c0_27 = arith.constant 0 : index
    %36 = vector.load %arg5[%35, %c0_26, %c0_27] : memref<8x2x32xf32, #tpu.memory_space<vmem>>, vector<1x2x32xf32>
    %37 = vector.shape_cast %36 : vector<1x2x32xf32> to vector<2x32xf32>
    %cst_28 = arith.constant dense<0.000000e+00> : vector<2x32xf32>
    %38 = tpu.matmul %37, %3, %cst_28 {dimension_numbers = #tpu.dot_dimension_numbers<[1], [0], [0], [1], [0, 0, 1, 1], [], []>} : vector<2x32xf32>, vector<32x32xf32>, vector<2x32xf32> -> vector<2x32xf32>
    %cst_29 = arith.constant dense<0.000000e+00> : vector<2x32xf32>
    %39 = tpu.matmul %30, %5, %cst_29 {dimension_numbers = #tpu.dot_dimension_numbers<[1], [0], [0], [1], [0, 0, 1, 1], [], []>} : vector<2x32xf32>, vector<32x32xf32>, vector<2x32xf32> -> vector<2x32xf32>
    %40 = arith.addf %38, %39 : vector<2x32xf32>
    %41 = arith.addf %40, %9 : vector<2x32xf32>
    %42 = math.tanh %41 : vector<2x32xf32>
    %43 = arith.index_cast %c2_i32 : i32 to index
    %c0_30 = arith.constant 0 : index
    %c0_31 = arith.constant 0 : index
    %44 = vector.load %arg5[%43, %c0_30, %c0_31] : memref<8x2x32xf32, #tpu.memory_space<vmem>>, vector<1x2x32xf32>
    %45 = vector.shape_cast %44 : vector<1x2x32xf32> to vector<2x32xf32>
    %46 = vector.shape_cast %42 : vector<2x32xf32> to vector<1x2x32xf32>
    tpu.vector_store %arg5[%43, %c0_30, %c0_31], %46 {strides = array<i32>} : memref<8x2x32xf32, #tpu.memory_space<vmem>>, vector<1x2x32xf32>,
    %c3_i32 = arith.constant 3 : i32
    %47 = arith.index_cast %c3_i32 : i32 to index
    %c0_32 = arith.constant 0 : index
    %c0_33 = arith.constant 0 : index
    %48 = vector.load %arg5[%47, %c0_32, %c0_33] : memref<8x2x32xf32, #tpu.memory_space<vmem>>, vector<1x2x32xf32>
    %49 = vector.shape_cast %48 : vector<1x2x32xf32> to vector<2x32xf32>
    %cst_34 = arith.constant dense<0.000000e+00> : vector<2x32xf32>
    %50 = tpu.matmul %49, %3, %cst_34 {dimension_numbers = #tpu.dot_dimension_numbers<[1], [0], [0], [1], [0, 0, 1, 1], [], []>} : vector<2x32xf32>, vector<32x32xf32>, vector<2x32xf32> -> vector<2x32xf32>
    %cst_35 = arith.constant dense<0.000000e+00> : vector<2x32xf32>
    %51 = tpu.matmul %42, %5, %cst_35 {dimension_numbers = #tpu.dot_dimension_numbers<[1], [0], [0], [1], [0, 0, 1, 1], [], []>} : vector<2x32xf32>, vector<32x32xf32>, vector<2x32xf32> -> vector<2x32xf32>
    %52 = arith.addf %50, %51 : vector<2x32xf32>
    %53 = arith.addf %52, %9 : vector<2x32xf32>
    %54 = math.tanh %53 : vector<2x32xf32>
    %55 = arith.index_cast %c3_i32 : i32 to index
    %c0_36 = arith.constant 0 : index
    %c0_37 = arith.constant 0 : index
    %56 = vector.load %arg5[%55, %c0_36, %c0_37] : memref<8x2x32xf32, #tpu.memory_space<vmem>>, vector<1x2x32xf32>
    %57 = vector.shape_cast %56 : vector<1x2x32xf32> to vector<2x32xf32>
    %58 = vector.shape_cast %54 : vector<2x32xf32> to vector<1x2x32xf32>
    tpu.vector_store %arg5[%55, %c0_36, %c0_37], %58 {strides = array<i32>} : memref<8x2x32xf32, #tpu.memory_space<vmem>>, vector<1x2x32xf32>,
    %c4_i32 = arith.constant 4 : i32
    %59 = arith.index_cast %c4_i32 : i32 to index
    %c0_38 = arith.constant 0 : index
    %c0_39 = arith.constant 0 : index
    %60 = vector.load %arg5[%59, %c0_38, %c0_39] : memref<8x2x32xf32, #tpu.memory_space<vmem>>, vector<1x2x32xf32>
    %61 = vector.shape_cast %60 : vector<1x2x32xf32> to vector<2x32xf32>
    %cst_40 = arith.constant dense<0.000000e+00> : vector<2x32xf32>
    %62 = tpu.matmul %61, %3, %cst_40 {dimension_numbers = #tpu.dot_dimension_numbers<[1], [0], [0], [1], [0, 0, 1, 1], [], []>} : vector<2x32xf32>, vector<32x32xf32>, vector<2x32xf32> -> vector<2x32xf32>
    %cst_41 = arith.constant dense<0.000000e+00> : vector<2x32xf32>
    %63 = tpu.matmul %54, %5, %cst_41 {dimension_numbers = #tpu.dot_dimension_numbers<[1], [0], [0], [1], [0, 0, 1, 1], [], []>} : vector<2x32xf32>, vector<32x32xf32>, vector<2x32xf32> -> vector<2x32xf32>
    %64 = arith.addf %62, %63 : vector<2x32xf32>
    %65 = arith.addf %64, %9 : vector<2x32xf32>
    %66 = math.tanh %65 : vector<2x32xf32>
    %67 = arith.index_cast %c4_i32 : i32 to index
    %c0_42 = arith.constant 0 : index
    %c0_43 = arith.constant 0 : index
    %68 = vector.load %arg5[%67, %c0_42, %c0_43] : memref<8x2x32xf32, #tpu.memory_space<vmem>>, vector<1x2x32xf32>
    %69 = vector.shape_cast %68 : vector<1x2x32xf32> to vector<2x32xf32>
    %70 = vector.shape_cast %66 : vector<2x32xf32> to vector<1x2x32xf32>
    tpu.vector_store %arg5[%67, %c0_42, %c0_43], %70 {strides = array<i32>} : memref<8x2x32xf32, #tpu.memory_space<vmem>>, vector<1x2x32xf32>,
    %c5_i32 = arith.constant 5 : i32
    %71 = arith.index_cast %c5_i32 : i32 to index
    %c0_44 = arith.constant 0 : index
    %c0_45 = arith.constant 0 : index
    %72 = vector.load %arg5[%71, %c0_44, %c0_45] : memref<8x2x32xf32, #tpu.memory_space<vmem>>, vector<1x2x32xf32>
    %73 = vector.shape_cast %72 : vector<1x2x32xf32> to vector<2x32xf32>
    %cst_46 = arith.constant dense<0.000000e+00> : vector<2x32xf32>
    %74 = tpu.matmul %73, %3, %cst_46 {dimension_numbers = #tpu.dot_dimension_numbers<[1], [0], [0], [1], [0, 0, 1, 1], [], []>} : vector<2x32xf32>, vector<32x32xf32>, vector<2x32xf32> -> vector<2x32xf32>
    %cst_47 = arith.constant dense<0.000000e+00> : vector<2x32xf32>
    %75 = tpu.matmul %66, %5, %cst_47 {dimension_numbers = #tpu.dot_dimension_numbers<[1], [0], [0], [1], [0, 0, 1, 1], [], []>} : vector<2x32xf32>, vector<32x32xf32>, vector<2x32xf32> -> vector<2x32xf32>
    %76 = arith.addf %74, %75 : vector<2x32xf32>
    %77 = arith.addf %76, %9 : vector<2x32xf32>
    %78 = math.tanh %77 : vector<2x32xf32>
    %79 = arith.index_cast %c5_i32 : i32 to index
    %c0_48 = arith.constant 0 : index
    %c0_49 = arith.constant 0 : index
    %80 = vector.load %arg5[%79, %c0_48, %c0_49] : memref<8x2x32xf32, #tpu.memory_space<vmem>>, vector<1x2x32xf32>
    %81 = vector.shape_cast %80 : vector<1x2x32xf32> to vector<2x32xf32>
    %82 = vector.shape_cast %78 : vector<2x32xf32> to vector<1x2x32xf32>
    tpu.vector_store %arg5[%79, %c0_48, %c0_49], %82 {strides = array<i32>} : memref<8x2x32xf32, #tpu.memory_space<vmem>>, vector<1x2x32xf32>,
    %c6_i32 = arith.constant 6 : i32
    %83 = arith.index_cast %c6_i32 : i32 to index
    %c0_50 = arith.constant 0 : index
    %c0_51 = arith.constant 0 : index
    %84 = vector.load %arg5[%83, %c0_50, %c0_51] : memref<8x2x32xf32, #tpu.memory_space<vmem>>, vector<1x2x32xf32>
    %85 = vector.shape_cast %84 : vector<1x2x32xf32> to vector<2x32xf32>
    %cst_52 = arith.constant dense<0.000000e+00> : vector<2x32xf32>
    %86 = tpu.matmul %85, %3, %cst_52 {dimension_numbers = #tpu.dot_dimension_numbers<[1], [0], [0], [1], [0, 0, 1, 1], [], []>} : vector<2x32xf32>, vector<32x32xf32>, vector<2x32xf32> -> vector<2x32xf32>
    %cst_53 = arith.constant dense<0.000000e+00> : vector<2x32xf32>
    %87 = tpu.matmul %78, %5, %cst_53 {dimension_numbers = #tpu.dot_dimension_numbers<[1], [0], [0], [1], [0, 0, 1, 1], [], []>} : vector<2x32xf32>, vector<32x32xf32>, vector<2x32xf32> -> vector<2x32xf32>
    %88 = arith.addf %86, %87 : vector<2x32xf32>
    %89 = arith.addf %88, %9 : vector<2x32xf32>
    %90 = math.tanh %89 : vector<2x32xf32>
    %91 = arith.index_cast %c6_i32 : i32 to index
    %c0_54 = arith.constant 0 : index
    %c0_55 = arith.constant 0 : index
    %92 = vector.load %arg5[%91, %c0_54, %c0_55] : memref<8x2x32xf32, #tpu.memory_space<vmem>>, vector<1x2x32xf32>
    %93 = vector.shape_cast %92 : vector<1x2x32xf32> to vector<2x32xf32>
    %94 = vector.shape_cast %90 : vector<2x32xf32> to vector<1x2x32xf32>
    tpu.vector_store %arg5[%91, %c0_54, %c0_55], %94 {strides = array<i32>} : memref<8x2x32xf32, #tpu.memory_space<vmem>>, vector<1x2x32xf32>,
    %c7_i32 = arith.constant 7 : i32
    %95 = arith.index_cast %c7_i32 : i32 to index
    %c0_56 = arith.constant 0 : index
    %c0_57 = arith.constant 0 : index
    %96 = vector.load %arg5[%95, %c0_56, %c0_57] : memref<8x2x32xf32, #tpu.memory_space<vmem>>, vector<1x2x32xf32>
    %97 = vector.shape_cast %96 : vector<1x2x32xf32> to vector<2x32xf32>
    %cst_58 = arith.constant dense<0.000000e+00> : vector<2x32xf32>
    %98 = tpu.matmul %97, %3, %cst_58 {dimension_numbers = #tpu.dot_dimension_numbers<[1], [0], [0], [1], [0, 0, 1, 1], [], []>} : vector<2x32xf32>, vector<32x32xf32>, vector<2x32xf32> -> vector<2x32xf32>
    %cst_59 = arith.constant dense<0.000000e+00> : vector<2x32xf32>
    %99 = tpu.matmul %90, %5, %cst_59 {dimension_numbers = #tpu.dot_dimension_numbers<[1], [0], [0], [1], [0, 0, 1, 1], [], []>} : vector<2x32xf32>, vector<32x32xf32>, vector<2x32xf32> -> vector<2x32xf32>
    %100 = arith.addf %98, %99 : vector<2x32xf32>
    %101 = arith.addf %100, %9 : vector<2x32xf32>
    %102 = math.tanh %101 : vector<2x32xf32>
    %103 = arith.index_cast %c7_i32 : i32 to index
    %c0_60 = arith.constant 0 : index
    %c0_61 = arith.constant 0 : index
    %104 = vector.load %arg5[%103, %c0_60, %c0_61] : memref<8x2x32xf32, #tpu.memory_space<vmem>>, vector<1x2x32xf32>
    %105 = vector.shape_cast %104 : vector<1x2x32xf32> to vector<2x32xf32>
    %106 = vector.shape_cast %102 : vector<2x32xf32> to vector<1x2x32xf32>
    tpu.vector_store %arg5[%103, %c0_60, %c0_61], %106 {strides = array<i32>} : memref<8x2x32xf32, #tpu.memory_space<vmem>>, vector<1x2x32xf32>,
    %c8_i32 = arith.constant 8 : i32
    %c1 = arith.constant 1 : index
    %c0_62 = arith.constant 0 : index
    %c0_63 = arith.constant 0 : index
    %107 = vector.load %arg1[%c1, %c0_62, %c0_63] : memref<2x32x32xf32, #tpu.memory_space<vmem>>, vector<1x32x32xf32>
    %108 = vector.shape_cast %107 : vector<1x32x32xf32> to vector<32x32xf32>
    %c1_64 = arith.constant 1 : index
    %c0_65 = arith.constant 0 : index
    %c0_66 = arith.constant 0 : index
    %109 = vector.load %arg2[%c1_64, %c0_65, %c0_66] : memref<2x32x32xf32, #tpu.memory_space<vmem>>, vector<1x32x32xf32>
    %110 = vector.shape_cast %109 : vector<1x32x32xf32> to vector<32x32xf32>
    %c1_67 = arith.constant 1 : index
    %c0_68 = arith.constant 0 : index
    %c0_69 = arith.constant 0 : index
    %111 = vector.load %arg3[%c1_67, %c0_68, %c0_69] : memref<2x1x32xf32, #tpu.memory_space<vmem>>, vector<1x1x32xf32>
    %112 = vector.shape_cast %111 : vector<1x1x32xf32> to vector<1x32xf32>
    %113 = vector.shape_cast %112 : vector<1x32xf32> to vector<1x32xf32>
    %114 = vector.broadcast %113 : vector<1x32xf32> to vector<2x32xf32>
    %cst_70 = arith.constant 0.000000e+00 : f32
    %115 = vector.broadcast %cst_70 : f32 to vector<2x32xf32>
    %c0_i32_71 = arith.constant 0 : i32
    %116 = arith.index_cast %c0_i32_71 : i32 to index
    %c0_72 = arith.constant 0 : index
    %c0_73 = arith.constant 0 : index
    %117 = vector.load %arg5[%116, %c0_72, %c0_73] : memref<8x2x32xf32, #tpu.memory_space<vmem>>, vector<1x2x32xf32>
    %118 = vector.shape_cast %117 : vector<1x2x32xf32> to vector<2x32xf32>
    %cst_74 = arith.constant dense<0.000000e+00> : vector<2x32xf32>
    %119 = tpu.matmul %118, %108, %cst_74 {dimension_numbers = #tpu.dot_dimension_numbers<[1], [0], [0], [1], [0, 0, 1, 1], [], []>} : vector<2x32xf32>, vector<32x32xf32>, vector<2x32xf32> -> vector<2x32xf32>
    %cst_75 = arith.constant dense<0.000000e+00> : vector<2x32xf32>
    %120 = tpu.matmul %115, %110, %cst_75 {dimension_numbers = #tpu.dot_dimension_numbers<[1], [0], [0], [1], [0, 0, 1, 1], [], []>} : vector<2x32xf32>, vector<32x32xf32>, vector<2x32xf32> -> vector<2x32xf32>
    %121 = arith.addf %119, %120 : vector<2x32xf32>
    %122 = arith.addf %121, %114 : vector<2x32xf32>
    %123 = math.tanh %122 : vector<2x32xf32>
    %124 = arith.index_cast %c0_i32_71 : i32 to index
    %c0_76 = arith.constant 0 : index
    %c0_77 = arith.constant 0 : index
    %125 = vector.load %arg5[%124, %c0_76, %c0_77] : memref<8x2x32xf32, #tpu.memory_space<vmem>>, vector<1x2x32xf32>
    %126 = vector.shape_cast %125 : vector<1x2x32xf32> to vector<2x32xf32>
    %127 = vector.shape_cast %123 : vector<2x32xf32> to vector<1x2x32xf32>
    tpu.vector_store %arg5[%124, %c0_76, %c0_77], %127 {strides = array<i32>} : memref<8x2x32xf32, #tpu.memory_space<vmem>>, vector<1x2x32xf32>,
    %c1_i32_78 = arith.constant 1 : i32
    %128 = arith.index_cast %c1_i32_78 : i32 to index
    %c0_79 = arith.constant 0 : index
    %c0_80 = arith.constant 0 : index
    %129 = vector.load %arg5[%128, %c0_79, %c0_80] : memref<8x2x32xf32, #tpu.memory_space<vmem>>, vector<1x2x32xf32>
    %130 = vector.shape_cast %129 : vector<1x2x32xf32> to vector<2x32xf32>
    %cst_81 = arith.constant dense<0.000000e+00> : vector<2x32xf32>
    %131 = tpu.matmul %130, %108, %cst_81 {dimension_numbers = #tpu.dot_dimension_numbers<[1], [0], [0], [1], [0, 0, 1, 1], [], []>} : vector<2x32xf32>, vector<32x32xf32>, vector<2x32xf32> -> vector<2x32xf32>
    %cst_82 = arith.constant dense<0.000000e+00> : vector<2x32xf32>
    %132 = tpu.matmul %123, %110, %cst_82 {dimension_numbers = #tpu.dot_dimension_numbers<[1], [0], [0], [1], [0, 0, 1, 1], [], []>} : vector<2x32xf32>, vector<32x32xf32>, vector<2x32xf32> -> vector<2x32xf32>
    %133 = arith.addf %131, %132 : vector<2x32xf32>
    %134 = arith.addf %133, %114 : vector<2x32xf32>
    %135 = math.tanh %134 : vector<2x32xf32>
    %136 = arith.index_cast %c1_i32_78 : i32 to index
    %c0_83 = arith.constant 0 : index
    %c0_84 = arith.constant 0 : index
    %137 = vector.load %arg5[%136, %c0_83, %c0_84] : memref<8x2x32xf32, #tpu.memory_space<vmem>>, vector<1x2x32xf32>
    %138 = vector.shape_cast %137 : vector<1x2x32xf32> to vector<2x32xf32>
    %139 = vector.shape_cast %135 : vector<2x32xf32> to vector<1x2x32xf32>
    tpu.vector_store %arg5[%136, %c0_83, %c0_84], %139 {strides = array<i32>} : memref<8x2x32xf32, #tpu.memory_space<vmem>>, vector<1x2x32xf32>,
    %c2_i32_85 = arith.constant 2 : i32
    %140 = arith.index_cast %c2_i32_85 : i32 to index
    %c0_86 = arith.constant 0 : index
    %c0_87 = arith.constant 0 : index
    %141 = vector.load %arg5[%140, %c0_86, %c0_87] : memref<8x2x32xf32, #tpu.memory_space<vmem>>, vector<1x2x32xf32>
    %142 = vector.shape_cast %141 : vector<1x2x32xf32> to vector<2x32xf32>
    %cst_88 = arith.constant dense<0.000000e+00> : vector<2x32xf32>
    %143 = tpu.matmul %142, %108, %cst_88 {dimension_numbers = #tpu.dot_dimension_numbers<[1], [0], [0], [1], [0, 0, 1, 1], [], []>} : vector<2x32xf32>, vector<32x32xf32>, vector<2x32xf32> -> vector<2x32xf32>
    %cst_89 = arith.constant dense<0.000000e+00> : vector<2x32xf32>
    %144 = tpu.matmul %135, %110, %cst_89 {dimension_numbers = #tpu.dot_dimension_numbers<[1], [0], [0], [1], [0, 0, 1, 1], [], []>} : vector<2x32xf32>, vector<32x32xf32>, vector<2x32xf32> -> vector<2x32xf32>
    %145 = arith.addf %143, %144 : vector<2x32xf32>
    %146 = arith.addf %145, %114 : vector<2x32xf32>
    %147 = math.tanh %146 : vector<2x32xf32>
    %148 = arith.index_cast %c2_i32_85 : i32 to index
    %c0_90 = arith.constant 0 : index
    %c0_91 = arith.constant 0 : index
    %149 = vector.load %arg5[%148, %c0_90, %c0_91] : memref<8x2x32xf32, #tpu.memory_space<vmem>>, vector<1x2x32xf32>
    %150 = vector.shape_cast %149 : vector<1x2x32xf32> to vector<2x32xf32>
    %151 = vector.shape_cast %147 : vector<2x32xf32> to vector<1x2x32xf32>
    tpu.vector_store %arg5[%148, %c0_90, %c0_91], %151 {strides = array<i32>} : memref<8x2x32xf32, #tpu.memory_space<vmem>>, vector<1x2x32xf32>,
    %c3_i32_92 = arith.constant 3 : i32
    %152 = arith.index_cast %c3_i32_92 : i32 to index
    %c0_93 = arith.constant 0 : index
    %c0_94 = arith.constant 0 : index
    %153 = vector.load %arg5[%152, %c0_93, %c0_94] : memref<8x2x32xf32, #tpu.memory_space<vmem>>, vector<1x2x32xf32>
    %154 = vector.shape_cast %153 : vector<1x2x32xf32> to vector<2x32xf32>
    %cst_95 = arith.constant dense<0.000000e+00> : vector<2x32xf32>
    %155 = tpu.matmul %154, %108, %cst_95 {dimension_numbers = #tpu.dot_dimension_numbers<[1], [0], [0], [1], [0, 0, 1, 1], [], []>} : vector<2x32xf32>, vector<32x32xf32>, vector<2x32xf32> -> vector<2x32xf32>
    %cst_96 = arith.constant dense<0.000000e+00> : vector<2x32xf32>
    %156 = tpu.matmul %147, %110, %cst_96 {dimension_numbers = #tpu.dot_dimension_numbers<[1], [0], [0], [1], [0, 0, 1, 1], [], []>} : vector<2x32xf32>, vector<32x32xf32>, vector<2x32xf32> -> vector<2x32xf32>
    %157 = arith.addf %155, %156 : vector<2x32xf32>
    %158 = arith.addf %157, %114 : vector<2x32xf32>
    %159 = math.tanh %158 : vector<2x32xf32>
    %160 = arith.index_cast %c3_i32_92 : i32 to index
    %c0_97 = arith.constant 0 : index
    %c0_98 = arith.constant 0 : index
    %161 = vector.load %arg5[%160, %c0_97, %c0_98] : memref<8x2x32xf32, #tpu.memory_space<vmem>>, vector<1x2x32xf32>
    %162 = vector.shape_cast %161 : vector<1x2x32xf32> to vector<2x32xf32>
    %163 = vector.shape_cast %159 : vector<2x32xf32> to vector<1x2x32xf32>
    tpu.vector_store %arg5[%160, %c0_97, %c0_98], %163 {strides = array<i32>} : memref<8x2x32xf32, #tpu.memory_space<vmem>>, vector<1x2x32xf32>,
    %c4_i32_99 = arith.constant 4 : i32
    %164 = arith.index_cast %c4_i32_99 : i32 to index
    %c0_100 = arith.constant 0 : index
    %c0_101 = arith.constant 0 : index
    %165 = vector.load %arg5[%164, %c0_100, %c0_101] : memref<8x2x32xf32, #tpu.memory_space<vmem>>, vector<1x2x32xf32>
    %166 = vector.shape_cast %165 : vector<1x2x32xf32> to vector<2x32xf32>
    %cst_102 = arith.constant dense<0.000000e+00> : vector<2x32xf32>
    %167 = tpu.matmul %166, %108, %cst_102 {dimension_numbers = #tpu.dot_dimension_numbers<[1], [0], [0], [1], [0, 0, 1, 1], [], []>} : vector<2x32xf32>, vector<32x32xf32>, vector<2x32xf32> -> vector<2x32xf32>
    %cst_103 = arith.constant dense<0.000000e+00> : vector<2x32xf32>
    %168 = tpu.matmul %159, %110, %cst_103 {dimension_numbers = #tpu.dot_dimension_numbers<[1], [0], [0], [1], [0, 0, 1, 1], [], []>} : vector<2x32xf32>, vector<32x32xf32>, vector<2x32xf32> -> vector<2x32xf32>
    %169 = arith.addf %167, %168 : vector<2x32xf32>
    %170 = arith.addf %169, %114 : vector<2x32xf32>
    %171 = math.tanh %170 : vector<2x32xf32>
    %172 = arith.index_cast %c4_i32_99 : i32 to index
    %c0_104 = arith.constant 0 : index
    %c0_105 = arith.constant 0 : index
    %173 = vector.load %arg5[%172, %c0_104, %c0_105] : memref<8x2x32xf32, #tpu.memory_space<vmem>>, vector<1x2x32xf32>
    %174 = vector.shape_cast %173 : vector<1x2x32xf32> to vector<2x32xf32>
    %175 = vector.shape_cast %171 : vector<2x32xf32> to vector<1x2x32xf32>
    tpu.vector_store %arg5[%172, %c0_104, %c0_105], %175 {strides = array<i32>} : memref<8x2x32xf32, #tpu.memory_space<vmem>>, vector<1x2x32xf32>,
    %c5_i32_106 = arith.constant 5 : i32
    %176 = arith.index_cast %c5_i32_106 : i32 to index
    %c0_107 = arith.constant 0 : index
    %c0_108 = arith.constant 0 : index
    %177 = vector.load %arg5[%176, %c0_107, %c0_108] : memref<8x2x32xf32, #tpu.memory_space<vmem>>, vector<1x2x32xf32>
    %178 = vector.shape_cast %177 : vector<1x2x32xf32> to vector<2x32xf32>
    %cst_109 = arith.constant dense<0.000000e+00> : vector<2x32xf32>
    %179 = tpu.matmul %178, %108, %cst_109 {dimension_numbers = #tpu.dot_dimension_numbers<[1], [0], [0], [1], [0, 0, 1, 1], [], []>} : vector<2x32xf32>, vector<32x32xf32>, vector<2x32xf32> -> vector<2x32xf32>
    %cst_110 = arith.constant dense<0.000000e+00> : vector<2x32xf32>
    %180 = tpu.matmul %171, %110, %cst_110 {dimension_numbers = #tpu.dot_dimension_numbers<[1], [0], [0], [1], [0, 0, 1, 1], [], []>} : vector<2x32xf32>, vector<32x32xf32>, vector<2x32xf32> -> vector<2x32xf32>
    %181 = arith.addf %179, %180 : vector<2x32xf32>
    %182 = arith.addf %181, %114 : vector<2x32xf32>
    %183 = math.tanh %182 : vector<2x32xf32>
    %184 = arith.index_cast %c5_i32_106 : i32 to index
    %c0_111 = arith.constant 0 : index
    %c0_112 = arith.constant 0 : index
    %185 = vector.load %arg5[%184, %c0_111, %c0_112] : memref<8x2x32xf32, #tpu.memory_space<vmem>>, vector<1x2x32xf32>
    %186 = vector.shape_cast %185 : vector<1x2x32xf32> to vector<2x32xf32>
    %187 = vector.shape_cast %183 : vector<2x32xf32> to vector<1x2x32xf32>
    tpu.vector_store %arg5[%184, %c0_111, %c0_112], %187 {strides = array<i32>} : memref<8x2x32xf32, #tpu.memory_space<vmem>>, vector<1x2x32xf32>,
    %c6_i32_113 = arith.constant 6 : i32
    %188 = arith.index_cast %c6_i32_113 : i32 to index
    %c0_114 = arith.constant 0 : index
    %c0_115 = arith.constant 0 : index
    %189 = vector.load %arg5[%188, %c0_114, %c0_115] : memref<8x2x32xf32, #tpu.memory_space<vmem>>, vector<1x2x32xf32>
    %190 = vector.shape_cast %189 : vector<1x2x32xf32> to vector<2x32xf32>
    %cst_116 = arith.constant dense<0.000000e+00> : vector<2x32xf32>
    %191 = tpu.matmul %190, %108, %cst_116 {dimension_numbers = #tpu.dot_dimension_numbers<[1], [0], [0], [1], [0, 0, 1, 1], [], []>} : vector<2x32xf32>, vector<32x32xf32>, vector<2x32xf32> -> vector<2x32xf32>
    %cst_117 = arith.constant dense<0.000000e+00> : vector<2x32xf32>
    %192 = tpu.matmul %183, %110, %cst_117 {dimension_numbers = #tpu.dot_dimension_numbers<[1], [0], [0], [1], [0, 0, 1, 1], [], []>} : vector<2x32xf32>, vector<32x32xf32>, vector<2x32xf32> -> vector<2x32xf32>
    %193 = arith.addf %191, %192 : vector<2x32xf32>
    %194 = arith.addf %193, %114 : vector<2x32xf32>
    %195 = math.tanh %194 : vector<2x32xf32>
    %196 = arith.index_cast %c6_i32_113 : i32 to index
    %c0_118 = arith.constant 0 : index
    %c0_119 = arith.constant 0 : index
    %197 = vector.load %arg5[%196, %c0_118, %c0_119] : memref<8x2x32xf32, #tpu.memory_space<vmem>>, vector<1x2x32xf32>
    %198 = vector.shape_cast %197 : vector<1x2x32xf32> to vector<2x32xf32>
    %199 = vector.shape_cast %195 : vector<2x32xf32> to vector<1x2x32xf32>
    tpu.vector_store %arg5[%196, %c0_118, %c0_119], %199 {strides = array<i32>} : memref<8x2x32xf32, #tpu.memory_space<vmem>>, vector<1x2x32xf32>,
    %c7_i32_120 = arith.constant 7 : i32
    %200 = arith.index_cast %c7_i32_120 : i32 to index
    %c0_121 = arith.constant 0 : index
    %c0_122 = arith.constant 0 : index
    %201 = vector.load %arg5[%200, %c0_121, %c0_122] : memref<8x2x32xf32, #tpu.memory_space<vmem>>, vector<1x2x32xf32>
    %202 = vector.shape_cast %201 : vector<1x2x32xf32> to vector<2x32xf32>
    %cst_123 = arith.constant dense<0.000000e+00> : vector<2x32xf32>
    %203 = tpu.matmul %202, %108, %cst_123 {dimension_numbers = #tpu.dot_dimension_numbers<[1], [0], [0], [1], [0, 0, 1, 1], [], []>} : vector<2x32xf32>, vector<32x32xf32>, vector<2x32xf32> -> vector<2x32xf32>
    %cst_124 = arith.constant dense<0.000000e+00> : vector<2x32xf32>
    %204 = tpu.matmul %195, %110, %cst_124 {dimension_numbers = #tpu.dot_dimension_numbers<[1], [0], [0], [1], [0, 0, 1, 1], [], []>} : vector<2x32xf32>, vector<32x32xf32>, vector<2x32xf32> -> vector<2x32xf32>
    %205 = arith.addf %203, %204 : vector<2x32xf32>
    %206 = arith.addf %205, %114 : vector<2x32xf32>
    %207 = math.tanh %206 : vector<2x32xf32>
    %208 = arith.index_cast %c7_i32_120 : i32 to index
    %c0_125 = arith.constant 0 : index
    %c0_126 = arith.constant 0 : index
    %209 = vector.load %arg5[%208, %c0_125, %c0_126] : memref<8x2x32xf32, #tpu.memory_space<vmem>>, vector<1x2x32xf32>
    %210 = vector.shape_cast %209 : vector<1x2x32xf32> to vector<2x32xf32>
    %211 = vector.shape_cast %207 : vector<2x32xf32> to vector<1x2x32xf32>
    tpu.vector_store %arg5[%208, %c0_125, %c0_126], %211 {strides = array<i32>} : memref<8x2x32xf32, #tpu.memory_space<vmem>>, vector<1x2x32xf32>,
    %c8_i32_127 = arith.constant 8 : i32
    %c0_128 = arith.constant 0 : index
    %c0_129 = arith.constant 0 : index
    %c0_130 = arith.constant 0 : index
    %212 = vector.load %arg5[%c0_128, %c0_129, %c0_130] : memref<8x2x32xf32, #tpu.memory_space<vmem>>, vector<8x2x32xf32>
    %c0_131 = arith.constant 0 : index
    %c0_132 = arith.constant 0 : index
    %c0_133 = arith.constant 0 : index
    %213 = vector.load %arg4[%c0_131, %c0_132, %c0_133] : memref<8x2x32xf32, #tpu.memory_space<vmem>>, vector<8x2x32xf32>
    tpu.vector_store %arg4[%c0_131, %c0_132, %c0_133], %212 {strides = array<i32>} : memref<8x2x32xf32, #tpu.memory_space<vmem>>, vector<8x2x32xf32>,
    return
  }
}

</mosaic_0001>

<bundles_post_ra>
// kernel: model_forward.1
= control target key start
LH: loop header
LB: loop body
LE: loop exit
PB: predicated region body
PF: predicated region fallthrough
CT: control target
= control target key end

     0   :  { %vm26_vm0 = vcmask 254976   ;;  %v3117_v2 = vmov 0.0   ;;  %s3706_s0 = inlined_call_operand.vmem [shape: f32[8,2,32], index: 0, kind: input, shape index: {}]   ;;  %s3707_s1 = inlined_call_operand.vmem [shape: f32[2,32,32], index: 1, kind: input, shape index: {}]   ;;  %s3708_s2 = inlined_call_operand.vmem [shape: f32[2,32,32], index: 2, kind: input, shape index: {}]   ;;  %s3709_s3 = inlined_call_operand.vmem [shape: f32[2,1,32], index: 3, kind: input, shape index: {}]   ;;  %s3710_s4 = inlined_call_operand.hbm [shape: f32[8,2,32], index: 4, kind: output, shape index: {}]  }
   0x1   :  { %v3150_v0 = vld [vmem:[%s3708_s2 + $0x18] sm:$0xff]  ;;  %2706 = vmatprep.subr.mxu0 %v3117_v2  ;;  %2717 = vmatprep.subr.mxu1 %v3117_v2  ;;  %v3162_v3 = vld [vmem:[%s3708_s2 + $0x10] sm:$0xff]  ;;  %v3174_v5 = vld [vmem:[%s3708_s2 + $0x8] sm:$0xff] }
   0x2   :  { %v3155_v1 = vld [vmem:[%s3707_s1 + $0x18] sm:$0xff]  ;;  %v3167_v4 = vld [vmem:[%s3707_s1 + $0x10] sm:$0xff]  ;;  %2707 = vmatpush3.msra.mxu0 %v3150_v0  ;;  %v3179_v6 = vld [vmem:[%s3707_s1 + $0x8] sm:$0xff] }
   0x3   :  { %2718 = vmatpush3.msra.mxu1 %v3155_v1  ;;  %v18_v7 = vld [vmem:[%s3706_s0] sm:$0x3]  ;;  %2708 = vmatprep.subr.mxu0 %v3117_v2  ;;  %v19_v8 = vld [vmem:[%s3706_s0 + $0x2] sm:$0x3]  ;;  %v20_v9 = vld [vmem:[%s3706_s0 + $0x4] sm:$0x3] }
   0x4   :  { %2719 = vmatprep.subr.mxu1 %v3117_v2  ;;  %27 = vst.msk [vmem:[#allocation2] sm:$0x3] %vm26_vm0, %v18_v7  ;;  %v21_v10 = vld [vmem:[%s3706_s0 + $0x6] sm:$0x3]  ;;  %2709 = vmatpush3.msra.mxu0 %v3162_v3  ;;  %28 = vst.msk [vmem:[#allocation2 + $0x2] sm:$0x3] %vm26_vm0, %v19_v8 }
   0x5   :  { %2720 = vmatpush3.msra.mxu1 %v3167_v4  ;;  %29 = vst.msk [vmem:[#allocation2 + $0x4] sm:$0x3] %vm26_vm0, %v20_v9  ;;  %30 = vst.msk [vmem:[#allocation2 + $0x6] sm:$0x3] %vm26_vm0, %v21_v10  ;;  %v22_v11 = vld [vmem:[%s3706_s0 + $0x8] sm:$0x3] }
   0x6   :  { %9 = vsyncpa [#allocation4], 0  ;;  %2710 = vmatprep.subr.mxu0 %v3117_v2  ;;  %2721 = vmatprep.subr.mxu1 %v3117_v2  ;;  %v3209_v12 = vld [vmem:[%s3708_s2] sm:$0xff]  ;;  %31 = vst.msk [vmem:[#allocation2 + $0x8] sm:$0x3] %vm26_vm0, %v22_v11  ;;  %vm3118_vm1 = vmmov 0  }
   0x7   :  { %2711 = vmatpush3.msra.mxu0 %v3174_v5  ;;  %2722 = vmatpush3.msra.mxu1 %v3179_v6  ;;  %v3217_v13 = vld [vmem:[%s3707_s1] sm:$0xff]  ;;  %vm51_vm2 = vcmask 261120   ;;  %v23_v19 = vld [vmem:[%s3706_s0 + $0xa] sm:$0x3]  ;;  %v24_v21 = vld [vmem:[%s3706_s0 + $0xc] sm:$0x3] }
   0x8   :  { %2712 = vmatprep.subr.mxu0 %v3117_v2  ;;  %2723 = vmatprep.subr.mxu1 %v3117_v2  ;;  %32 = vst.msk [vmem:[#allocation2 + $0xa] sm:$0x3] %vm26_vm0, %v23_v19  ;;  %33 = vst.msk [vmem:[#allocation2 + $0xc] sm:$0x3] %vm26_vm0, %v24_v21  ;;  %v25_v23 = vld [vmem:[%s3706_s0 + $0xe] sm:$0x3] }
   0x9   :  { %2713 = vmatpush3.msra.mxu0 %v3209_v12  ;;  %2714 = vmatprep.mubr.msk.f32.mxu0 %vm3118_vm1, %v3117_v2  ;;  %34 = vst.msk [vmem:[#allocation2 + $0xe] sm:$0x3] %vm26_vm0, %v25_v23  ;;  %v3331_v25 = vld [vmem:[%s3707_s1 + $0x38] sm:$0xff]  ;;  %v3338_v26 = vld [vmem:[%s3707_s1 + $0x30] sm:$0xff]  ;;  %v3347_v27 = vld [vmem:[%s3707_s1 + $0x28] sm:$0xff] }
   0xa   :  { %2724 = vmatpush3.msra.mxu1 %v3217_v13  ;;  %2725 = vmatprep.mubr.msk.f32.mxu1 %vm3118_vm1, %v3117_v2  ;;  %v3354_v28 = vld [vmem:[%s3707_s1 + $0x20] sm:$0xff] }
   0xb   :  { %2715 = vmatmul.mubr.f32.vlgmr.msra.gmra.mxu0 %v3117_v2  ;;  %v50_v14 = vld [vmem:[#allocation2] sm:$0x3]  ;;  %2739 = vmatprep.subr.mxu1 %v3117_v2  ;;  %v202_v15 = vld [vmem:[#allocation2 + $0x2] sm:$0x3] }
   0xc   :  { %2726 = vmatmul.mubr.msk.f32.vlgmr.msra.gmra.mxu1 %vm51_vm2, %v50_v14  ;;  %2728 = vmatprep.subr.mxu0 %v3117_v2  ;;  %v353_v16 = vld [vmem:[#allocation2 + $0x4] sm:$0x3]  ;;  %v504_v17 = vld [vmem:[#allocation2 + $0x6] sm:$0x3]  ;;  %v3363_v30 = vld [vmem:[%s3709_s3] ss:$0 sm:$0xff] }
   0xd   :  { %2740 = vmatpush3.msra.mxu1 %v3155_v1  ;;  %2747 = vmatprep.mubr.msk.f32.mxu1 %vm3118_vm1, %v3117_v2  ;;  %v655_v18 = vld [vmem:[#allocation2 + $0x8] sm:$0x3] }
   0xe   :  { %2741 = vmatprep.subr.mxu1 %v3117_v2  ;;  %2729 = vmatpush3.msra.mxu0 %v3150_v0 }
   0xf   :  { %2742 = vmatpush3.msra.mxu1 %v3167_v4  ;;  %2730 = vmatprep.subr.mxu0 %v3117_v2  ;;  %v806_v20 = vld [vmem:[#allocation2 + $0xa] sm:$0x3]  ;;  %v957_v22 = vld [vmem:[#allocation2 + $0xc] sm:$0x3] }
  0x10   :  { %2743 = vmatprep.subr.mxu1 %v3117_v2  ;;  %2731 = vmatpush3.msra.mxu0 %v3162_v3  ;;  %v1108_v24 = vld [vmem:[#allocation2 + $0xe] sm:$0x3] }
  0x11   :  { %2744 = vmatpush3.msra.mxu1 %v3179_v6  ;;  %2732 = vmatprep.subr.mxu0 %v3117_v2 }
  0x12   :  { %2745 = vmatprep.subr.mxu1 %v3117_v2  ;;  %2733 = vmatpush3.msra.mxu0 %v3174_v5 }
  0x13   :  { %2746 = vmatpush3.msra.mxu1 %v3217_v13  ;;  %2734 = vmatprep.subr.mxu0 %v3117_v2 }
  0x14   :  { %2761 = vmatprep.subr.mxu1 %v3117_v2  ;;  %2748 = vmatmul.mubr.msk.f32.vlgmr.msra.gmra.mxu1 %vm51_vm2, %v202_v15 }
  0x15   :  { %2762 = vmatpush3.msra.mxu1 %v3155_v1  ;;  %2769 = vmatprep.mubr.msk.f32.mxu1 %vm3118_vm1, %v3117_v2 }
  0x16   :  { %2763 = vmatprep.subr.mxu1 %v3117_v2  ;;  %2735 = vmatpush3.msra.mxu0 %v3209_v12 }
  0x17   :  { %2764 = vmatpush3.msra.mxu1 %v3167_v4  ;;  %2736 = vmatprep.mubr.msk.f32.mxu0 %vm3118_vm1, %v3117_v2 }
  0x18   :  { %2765 = vmatprep.subr.mxu1 %v3117_v2  ;;  %2750 = vmatprep.subr.mxu0 %v3117_v2 }
  0x19   :  { %2766 = vmatpush3.msra.mxu1 %v3179_v6 }
  0x1a   :  { %2767 = vmatprep.subr.mxu1 %v3117_v2 }
  0x1b   :  { %2768 = vmatpush3.msra.mxu1 %v3217_v13 }
  0x1c   :  { %2783 = vmatprep.subr.mxu1 %v3117_v2  ;;  %2770 = vmatmul.mubr.msk.f32.vlgmr.msra.gmra.mxu1 %vm51_vm2, %v353_v16 }
  0x1d   :  { %2784 = vmatpush3.msra.mxu1 %v3155_v1  ;;  %2791 = vmatprep.mubr.msk.f32.mxu1 %vm3118_vm1, %v3117_v2 }
  0x1e   :  { %2785 = vmatprep.subr.mxu1 %v3117_v2 }
  0x1f   :  { %2786 = vmatpush3.msra.mxu1 %v3167_v4 }
  0x20   :  { %2787 = vmatprep.subr.mxu1 %v3117_v2 }
  0x21   :  { %2788 = vmatpush3.msra.mxu1 %v3179_v6 }
  0x22   :  { %2789 = vmatprep.subr.mxu1 %v3117_v2 }
  0x23   :  { %2790 = vmatpush3.msra.mxu1 %v3217_v13 }
  0x24   :  { %2805 = vmatprep.subr.mxu1 %v3117_v2  ;;  %2792 = vmatmul.mubr.msk.f32.vlgmr.msra.gmra.mxu1 %vm51_vm2, %v504_v17 }
  0x25   :  { %2806 = vmatpush3.msra.mxu1 %v3155_v1  ;;  %2813 = vmatprep.mubr.msk.f32.mxu1 %vm3118_vm1, %v3117_v2 }
  0x26   :  { %2807 = vmatprep.subr.mxu1 %v3117_v2 }
  0x27   :  { %2808 = vmatpush3.msra.mxu1 %v3167_v4 }
  0x28   :  { %2809 = vmatprep.subr.mxu1 %v3117_v2 }
  0x29   :  { %2810 = vmatpush3.msra.mxu1 %v3179_v6 }
  0x2a   :  { %2811 = vmatprep.subr.mxu1 %v3117_v2 }
  0x2b   :  { %2812 = vmatpush3.msra.mxu1 %v3217_v13 }
  0x2c   :  { %2827 = vmatprep.subr.mxu1 %v3117_v2  ;;  %2814 = vmatmul.mubr.msk.f32.vlgmr.msra.gmra.mxu1 %vm51_vm2, %v655_v18 }
  0x2d   :  { %2828 = vmatpush3.msra.mxu1 %v3155_v1  ;;  %2835 = vmatprep.mubr.msk.f32.mxu1 %vm3118_vm1, %v3117_v2 }
  0x2e   :  { %2829 = vmatprep.subr.mxu1 %v3117_v2 }
  0x2f   :  { %2830 = vmatpush3.msra.mxu1 %v3167_v4 }
  0x30   :  { %2831 = vmatprep.subr.mxu1 %v3117_v2 }
  0x31   :  { %2832 = vmatpush3.msra.mxu1 %v3179_v6 }
  0x32   :  { %2833 = vmatprep.subr.mxu1 %v3117_v2 }
  0x33   :  { %2834 = vmatpush3.msra.mxu1 %v3217_v13 }
  0x34   :  { %2849 = vmatprep.subr.mxu1 %v3117_v2  ;;  %2836 = vmatmul.mubr.msk.f32.vlgmr.msra.gmra.mxu1 %vm51_vm2, %v806_v20 }
  0x35   :  { %2850 = vmatpush3.msra.mxu1 %v3155_v1  ;;  %2857 = vmatprep.mubr.msk.f32.mxu1 %vm3118_vm1, %v3117_v2 }
  0x36   :  { %2851 = vmatprep.subr.mxu1 %v3117_v2 }
  0x37   :  { %2852 = vmatpush3.msra.mxu1 %v3167_v4 }
  0x38   :  { %2853 = vmatprep.subr.mxu1 %v3117_v2 }
  0x39   :  { %2854 = vmatpush3.msra.mxu1 %v3179_v6 }
  0x3a   :  { %2855 = vmatprep.subr.mxu1 %v3117_v2 }
  0x3b   :  { %2856 = vmatpush3.msra.mxu1 %v3217_v13 }
  0x3c   :  { %2871 = vmatprep.subr.mxu1 %v3117_v2  ;;  %2858 = vmatmul.mubr.msk.f32.vlgmr.msra.gmra.mxu1 %vm51_vm2, %v957_v22 }
  0x3d   :  { %2872 = vmatpush3.msra.mxu1 %v3155_v1  ;;  %2879 = vmatprep.mubr.msk.f32.mxu1 %vm3118_vm1, %v3117_v2 }
  0x3e   :  { %2873 = vmatprep.subr.mxu1 %v3117_v2 }
  0x3f   :  { %2874 = vmatpush3.msra.mxu1 %v3167_v4 }
  0x40   :  { %2875 = vmatprep.subr.mxu1 %v3117_v2 }
  0x41   :  { %2876 = vmatpush3.msra.mxu1 %v3179_v6 }
  0x42   :  { %2877 = vmatprep.subr.mxu1 %v3117_v2 }
  0x43   :  { %2878 = vmatpush3.msra.mxu1 %v3217_v13 }
  0x44   :  { %2893 = vmatprep.subr.mxu1 %v3117_v2  ;;  %2880 = vmatmul.mubr.msk.f32.vlgmr.msra.gmra.mxu1 %vm51_vm2, %v1108_v24 }
  0x45   :  { %2894 = vmatpush3.msra.mxu1 %v3331_v25  ;;  %2901 = vmatprep.mubr.msk.f32.mxu1 %vm3118_vm1, %v3117_v2 }
  0x46   :  { %2895 = vmatprep.subr.mxu1 %v3117_v2 }
  0x47   :  { %2896 = vmatpush3.msra.mxu1 %v3338_v26 }
  0x48   :  { %2897 = vmatprep.subr.mxu1 %v3117_v2 }
  0x49   :  { %2898 = vmatpush3.msra.mxu1 %v3347_v27 }
  0x4a   :  { %2899 = vmatprep.subr.mxu1 %v3117_v2 }
  0x4b   :  { %2900 = vmatpush3.msra.mxu1 %v3354_v28 }
  0x4c   :  { %2915 = vmatprep.subr.mxu1 %v3117_v2 }
  0xcb   :  { %v121_v29 = vpop.f32.mrf.mxu0 }
  0xcc   :  { %v194_v31 = vpop.f32.mrf.mxu1 }
  0xcd   :  { %v195_v32 = vadd.f32 %v194_v31, %v121_v29  ;;  %v2716_v33 = vpop.f32.mrf.mxu0 }
  0xce   :  { %v2727_v34 = vpop.f32.mrf.mxu1 }
  0xcf   :  { %v198_v35 = vadd.f32 %v3363_v30, %v195_v32 }
  0xd1   :  { %3063 = vtanh.f32 %v198_v35 }
  0xd4   :  { %v345_v36 = vpop.f32.mrf.mxu1 }
  0xd6   :  { %v2749_v37 = vpop.f32.mrf.mxu1 }
  0xdc   :  { %v3366_v38 = vpop.f32.mrf.mxu1 }
  0xde   :  { %v3064_v39 = vpop.eup %3063  ;;  %v2771_v40 = vpop.f32.mrf.mxu1 }
  0xdf   :  { %200 = vst.msk [vmem:[#allocation2] sm:$0x3] %vm26_vm0, %v3064_v39  ;;  %2737 = vmatmul.mubr.msk.f32.vlgmr.msra.gmra.mxu0 %vm51_vm2, %v3064_v39  ;;  %v3542_v40 = vld [vmem:[%s3708_s2 + $0x38] sm:$0xff] }
  0xe0   :  { %2751 = vmatpush3.msra.mxu0 %v3150_v0  ;;  %2758 = vmatprep.mubr.msk.f32.mxu0 %vm3118_vm1, %v3117_v2 }
  0xe1   :  { %2752 = vmatprep.subr.mxu0 %v3117_v2 }
  0xe2   :  { %2753 = vmatpush3.msra.mxu0 %v3162_v3 }
  0xe3   :  { %2754 = vmatprep.subr.mxu0 %v3117_v2 }
  0xe4   :  { %v3376_v41 = vpop.f32.mrf.mxu1  ;;  %2755 = vmatpush3.msra.mxu0 %v3174_v5 }
  0xe5   :  { %2756 = vmatprep.subr.mxu0 %v3117_v2 }
  0xe6   :  { %v1276_v42 = vld [vmem:[#allocation2] sm:$0x3]  ;;  %v2793_v43 = vpop.f32.mrf.mxu1  ;;  %2757 = vmatpush3.msra.mxu0 %v3209_v12 }
  0xe7   :  { %2902 = vmatmul.mubr.msk.f32.vlgmr.msra.gmra.mxu1 %vm51_vm2, %v1276_v42  ;;  %2772 = vmatprep.subr.mxu0 %v3117_v2  ;;  %v3549_v42 = vld [vmem:[%s3708_s2 + $0x30] sm:$0xff]  ;;  %v3558_v43 = vld [vmem:[%s3708_s2 + $0x28] sm:$0xff] }
  0xe8   :  { %2916 = vmatpush3.msra.mxu1 %v3331_v25  ;;  %2923 = vmatprep.mubr.msk.f32.mxu1 %vm3118_vm1, %v3117_v2 }
  0xe9   :  { %2917 = vmatprep.subr.mxu1 %v3117_v2 }
  0xea   :  { %2918 = vmatpush3.msra.mxu1 %v3338_v26 }
  0xeb   :  { %2919 = vmatprep.subr.mxu1 %v3117_v2 }
  0xec   :  { %v3389_v44 = vpop.f32.mrf.mxu1  ;;  %2920 = vmatpush3.msra.mxu1 %v3347_v27 }
  0xed   :  { %2921 = vmatprep.subr.mxu1 %v3117_v2 }
  0xee   :  { %v2815_v45 = vpop.f32.mrf.mxu1  ;;  %2922 = vmatpush3.msra.mxu1 %v3354_v28 }
  0xef   :  { %2937 = vmatprep.subr.mxu1 %v3117_v2 }
  0xf4   :  { %v3395_v46 = vpop.f32.mrf.mxu1 }
  0xf6   :  { %v2837_v47 = vpop.f32.mrf.mxu1 }
  0xf7   :  { %v3597_v47 = vld [vmem:[%s3709_s3 + $0x1] ss:$0 sm:$0xff]  ;;  %s3119_s3 = smov [#allocation3]  }
  0xf8   :  { %s2494_s12 = sshll.u32 %s3119_s3, 4  ;;  %s2495_s12 = int_to_ptr.vmem [resolvable:$true] %s2494_s12 }
  0xf9   :  { %s3095_s13 = scalar_lea.vmem %s2495_s12, 256  ;;  %p3100_p1 = scmp.lt.s32.totalorder %s2495_s12, %s2495_s12 }
  0xfa   :  { %p3096_p0 = scmp.ne.s32.totalorder %s2495_s12, %s3095_s13  ;;  %p3101_p2 = scmp.lt.s32.totalorder %s3095_s13, %s3095_s13 }
  0xfc   :  { %v3397_v48 = vpop.f32.mrf.mxu1  ;;  %p3102_p3 = por %p3101_p2, %p3100_p1 }
  0xfe   :  { %v2859_v49 = vpop.f32.mrf.mxu1  ;;  %p3103_p4 = pnand %p3102_p3, %p3096_p0 }
 0x104   :  { %v3399_v50 = vpop.f32.mrf.mxu1 }
 0x106   :  { %v2881_v51 = vpop.f32.mrf.mxu1 }
 0x19f   :  { %v272_v52 = vpop.f32.mrf.mxu0 }
 0x1a0   :  { %v346_v53 = vadd.f32 %v345_v36, %v272_v52 }
 0x1a1   :  { %v2738_v54 = vpop.f32.mrf.mxu0 }
 0x1a2   :  { %v349_v55 = vadd.f32 %v3363_v30, %v346_v53 }
 0x1a4   :  { %3065 = vtanh.f32 %v349_v55 }
 0x1a7   :  { %v3402_v56 = vpop.f32.mrf.mxu1 }
 0x1a9   :  { %v2903_v57 = vpop.f32.mrf.mxu1 }
 0x1b1   :  { %v3066_v58 = vpop.eup %3065 }
 0x1b2   :  { %351 = vst.msk [vmem:[#allocation2 + $0x2] sm:$0x3] %vm26_vm0, %v3066_v58  ;;  %2759 = vmatmul.mubr.msk.f32.vlgmr.msra.gmra.mxu0 %vm51_vm2, %v3066_v58 }
 0x1b3   :  { %2773 = vmatpush3.msra.mxu0 %v3150_v0  ;;  %2780 = vmatprep.mubr.msk.f32.mxu0 %vm3118_vm1, %v3117_v2 }
 0x1b4   :  { %2774 = vmatprep.subr.mxu0 %v3117_v2 }
 0x1b5   :  { %2775 = vmatpush3.msra.mxu0 %v3162_v3 }
 0x1b6   :  { %2776 = vmatprep.subr.mxu0 %v3117_v2 }
 0x1b7   :  { %2777 = vmatpush3.msra.mxu0 %v3174_v5 }
 0x1b8   :  { %2778 = vmatprep.subr.mxu0 %v3117_v2 }
 0x1b9   :  { %v1423_v59 = vld [vmem:[#allocation2 + $0x2] sm:$0x3]  ;;  %2779 = vmatpush3.msra.mxu0 %v3209_v12 }
 0x1ba   :  { %2924 = vmatmul.mubr.msk.f32.vlgmr.msra.gmra.mxu1 %vm51_vm2, %v1423_v59  ;;  %2794 = vmatprep.subr.mxu0 %v3117_v2 }
 0x1bb   :  { %2938 = vmatpush3.msra.mxu1 %v3331_v25  ;;  %2945 = vmatprep.mubr.msk.f32.mxu1 %vm3118_vm1, %v3117_v2 }
 0x1bc   :  { %2939 = vmatprep.subr.mxu1 %v3117_v2 }
 0x1bd   :  { %2940 = vmatpush3.msra.mxu1 %v3338_v26 }
 0x1be   :  { %2941 = vmatprep.subr.mxu1 %v3117_v2 }
 0x1bf   :  { %2942 = vmatpush3.msra.mxu1 %v3347_v27 }
 0x1c0   :  { %2943 = vmatprep.subr.mxu1 %v3117_v2 }
 0x1c1   :  { %2944 = vmatpush3.msra.mxu1 %v3354_v28 }
 0x1c2   :  { %2959 = vmatprep.subr.mxu1 %v3117_v2 }
 0x272   :  { %v423_v60 = vpop.f32.mrf.mxu0 }
 0x273   :  { %v497_v61 = vadd.f32 %v3366_v38, %v423_v60 }
 0x274   :  { %v2760_v62 = vpop.f32.mrf.mxu0 }
 0x275   :  { %v500_v63 = vadd.f32 %v3363_v30, %v497_v61 }
 0x277   :  { %3067 = vtanh.f32 %v500_v63 }
 0x27a   :  { %v3429_v1 = vpop.f32.mrf.mxu1 }
 0x27c   :  { %v2925_v4 = vpop.f32.mrf.mxu1 }
 0x284   :  { %v3068_v6 = vpop.eup %3067 }
 0x285   :  { %502 = vst.msk [vmem:[#allocation2 + $0x4] sm:$0x3] %vm26_vm0, %v3068_v6  ;;  %2781 = vmatmul.mubr.msk.f32.vlgmr.msra.gmra.mxu0 %vm51_vm2, %v3068_v6 }
 0x286   :  { %2795 = vmatpush3.msra.mxu0 %v3150_v0  ;;  %2802 = vmatprep.mubr.msk.f32.mxu0 %vm3118_vm1, %v3117_v2 }
 0x287   :  { %2796 = vmatprep.subr.mxu0 %v3117_v2 }
 0x288   :  { %2797 = vmatpush3.msra.mxu0 %v3162_v3 }
 0x289   :  { %2798 = vmatprep.subr.mxu0 %v3117_v2 }
 0x28a   :  { %2799 = vmatpush3.msra.mxu0 %v3174_v5 }
 0x28b   :  { %2800 = vmatprep.subr.mxu0 %v3117_v2 }
 0x28c   :  { %v1573_v7 = vld [vmem:[#allocation2 + $0x4] sm:$0x3]  ;;  %2801 = vmatpush3.msra.mxu0 %v3209_v12 }
 0x28d   :  { %2946 = vmatmul.mubr.msk.f32.vlgmr.msra.gmra.mxu1 %vm51_vm2, %v1573_v7  ;;  %2816 = vmatprep.subr.mxu0 %v3117_v2 }
 0x28e   :  { %2960 = vmatpush3.msra.mxu1 %v3331_v25  ;;  %2967 = vmatprep.mubr.msk.f32.mxu1 %vm3118_vm1, %v3117_v2 }
 0x28f   :  { %2961 = vmatprep.subr.mxu1 %v3117_v2 }
 0x290   :  { %2962 = vmatpush3.msra.mxu1 %v3338_v26 }
 0x291   :  { %2963 = vmatprep.subr.mxu1 %v3117_v2 }
 0x292   :  { %2964 = vmatpush3.msra.mxu1 %v3347_v27 }
 0x293   :  { %2965 = vmatprep.subr.mxu1 %v3117_v2 }
 0x294   :  { %2966 = vmatpush3.msra.mxu1 %v3354_v28 }
 0x295   :  { %2981 = vmatprep.subr.mxu1 %v3117_v2 }
 0x345   :  { %v574_v8 = vpop.f32.mrf.mxu0 }
 0x346   :  { %v648_v9 = vadd.f32 %v3376_v41, %v574_v8 }
 0x347   :  { %v2782_v10 = vpop.f32.mrf.mxu0 }
 0x348   :  { %v651_v11 = vadd.f32 %v3363_v30, %v648_v9 }
 0x34a   :  { %3069 = vtanh.f32 %v651_v11 }
 0x34d   :  { %v3456_v13 = vpop.f32.mrf.mxu1 }
 0x34f   :  { %v2947_v14 = vpop.f32.mrf.mxu1 }
 0x357   :  { %v3070_v15 = vpop.eup %3069 }
 0x358   :  { %653 = vst.msk [vmem:[#allocation2 + $0x6] sm:$0x3] %vm26_vm0, %v3070_v15  ;;  %2803 = vmatmul.mubr.msk.f32.vlgmr.msra.gmra.mxu0 %vm51_vm2, %v3070_v15 }
 0x359   :  { %2817 = vmatpush3.msra.mxu0 %v3150_v0  ;;  %2824 = vmatprep.mubr.msk.f32.mxu0 %vm3118_vm1, %v3117_v2 }
 0x35a   :  { %2818 = vmatprep.subr.mxu0 %v3117_v2 }
 0x35b   :  { %2819 = vmatpush3.msra.mxu0 %v3162_v3 }
 0x35c   :  { %2820 = vmatprep.subr.mxu0 %v3117_v2 }
 0x35d   :  { %2821 = vmatpush3.msra.mxu0 %v3174_v5 }
 0x35e   :  { %2822 = vmatprep.subr.mxu0 %v3117_v2 }
 0x35f   :  { %v1723_v16 = vld [vmem:[#allocation2 + $0x6] sm:$0x3]  ;;  %2823 = vmatpush3.msra.mxu0 %v3209_v12 }
 0x360   :  { %2968 = vmatmul.mubr.msk.f32.vlgmr.msra.gmra.mxu1 %vm51_vm2, %v1723_v16  ;;  %2838 = vmatprep.subr.mxu0 %v3117_v2 }
 0x361   :  { %2982 = vmatpush3.msra.mxu1 %v3331_v25  ;;  %2989 = vmatprep.mubr.msk.f32.mxu1 %vm3118_vm1, %v3117_v2 }
 0x362   :  { %2983 = vmatprep.subr.mxu1 %v3117_v2 }
 0x363   :  { %2984 = vmatpush3.msra.mxu1 %v3338_v26 }
 0x364   :  { %2985 = vmatprep.subr.mxu1 %v3117_v2 }
 0x365   :  { %2986 = vmatpush3.msra.mxu1 %v3347_v27 }
 0x366   :  { %2987 = vmatprep.subr.mxu1 %v3117_v2 }
 0x367   :  { %2988 = vmatpush3.msra.mxu1 %v3354_v28 }
 0x368   :  { %3003 = vmatprep.subr.mxu1 %v3117_v2 }
 0x418   :  { %v725_v17 = vpop.f32.mrf.mxu0 }
 0x419   :  { %v799_v18 = vadd.f32 %v3389_v44, %v725_v17  ;;  %v3565_v44 = vld [vmem:[%s3708_s2 + $0x20] sm:$0xff] }
 0x41a   :  { %v2804_v19 = vpop.f32.mrf.mxu0 }
 0x41b   :  { %v802_v20 = vadd.f32 %v3363_v30, %v799_v18 }
 0x41d   :  { %3071 = vtanh.f32 %v802_v20 }
 0x420   :  { %v3483_v21 = vpop.f32.mrf.mxu1 }
 0x422   :  { %v2969_v22 = vpop.f32.mrf.mxu1 }
 0x42a   :  { %v3072_v23 = vpop.eup %3071 }
 0x42b   :  { %804 = vst.msk [vmem:[#allocation2 + $0x8] sm:$0x3] %vm26_vm0, %v3072_v23  ;;  %2825 = vmatmul.mubr.msk.f32.vlgmr.msra.gmra.mxu0 %vm51_vm2, %v3072_v23 }
 0x42c   :  { %2839 = vmatpush3.msra.mxu0 %v3150_v0  ;;  %2846 = vmatprep.mubr.msk.f32.mxu0 %vm3118_vm1, %v3117_v2 }
 0x42d   :  { %2840 = vmatprep.subr.mxu0 %v3117_v2 }
 0x42e   :  { %2841 = vmatpush3.msra.mxu0 %v3162_v3 }
 0x42f   :  { %2842 = vmatprep.subr.mxu0 %v3117_v2 }
 0x430   :  { %2843 = vmatpush3.msra.mxu0 %v3174_v5 }
 0x431   :  { %2844 = vmatprep.subr.mxu0 %v3117_v2 }
 0x432   :  { %v1873_v24 = vld [vmem:[#allocation2 + $0x8] sm:$0x3]  ;;  %2845 = vmatpush3.msra.mxu0 %v3209_v12 }
 0x433   :  { %2990 = vmatmul.mubr.msk.f32.vlgmr.msra.gmra.mxu1 %vm51_vm2, %v1873_v24  ;;  %2860 = vmatprep.subr.mxu0 %v3117_v2 }
 0x434   :  { %3004 = vmatpush3.msra.mxu1 %v3331_v25  ;;  %3011 = vmatprep.mubr.msk.f32.mxu1 %vm3118_vm1, %v3117_v2 }
 0x435   :  { %3005 = vmatprep.subr.mxu1 %v3117_v2 }
 0x436   :  { %3006 = vmatpush3.msra.mxu1 %v3338_v26 }
 0x437   :  { %3007 = vmatprep.subr.mxu1 %v3117_v2 }
 0x438   :  { %3008 = vmatpush3.msra.mxu1 %v3347_v27 }
 0x439   :  { %3009 = vmatprep.subr.mxu1 %v3117_v2 }
 0x43a   :  { %3010 = vmatpush3.msra.mxu1 %v3354_v28 }
 0x43b   :  { %3025 = vmatprep.subr.mxu1 %v3117_v2 }
 0x4eb   :  { %v876_v29 = vpop.f32.mrf.mxu0 }
 0x4ec   :  { %v950_v31 = vadd.f32 %v3395_v46, %v876_v29 }
 0x4ed   :  { %v2826_v32 = vpop.f32.mrf.mxu0 }
 0x4ee   :  { %v953_v33 = vadd.f32 %v3363_v30, %v950_v31 }
 0x4f0   :  { %3073 = vtanh.f32 %v953_v33 }
 0x4f3   :  { %v3510_v34 = vpop.f32.mrf.mxu1 }
 0x4f5   :  { %v2991_v35 = vpop.f32.mrf.mxu1 }
 0x4fd   :  { %v3074_v36 = vpop.eup %3073 }
 0x4fe   :  { %955 = vst.msk [vmem:[#allocation2 + $0xa] sm:$0x3] %vm26_vm0, %v3074_v36  ;;  %2847 = vmatmul.mubr.msk.f32.vlgmr.msra.gmra.mxu0 %vm51_vm2, %v3074_v36 }
 0x4ff   :  { %2861 = vmatpush3.msra.mxu0 %v3150_v0  ;;  %2868 = vmatprep.mubr.msk.f32.mxu0 %vm3118_vm1, %v3117_v2 }
 0x500   :  { %2862 = vmatprep.subr.mxu0 %v3117_v2 }
 0x501   :  { %2863 = vmatpush3.msra.mxu0 %v3162_v3 }
 0x502   :  { %2864 = vmatprep.subr.mxu0 %v3117_v2 }
 0x503   :  { %2865 = vmatpush3.msra.mxu0 %v3174_v5 }
 0x504   :  { %2866 = vmatprep.subr.mxu0 %v3117_v2 }
 0x505   :  { %v2023_v37 = vld [vmem:[#allocation2 + $0xa] sm:$0x3]  ;;  %2867 = vmatpush3.msra.mxu0 %v3209_v12 }
 0x506   :  { %3012 = vmatmul.mubr.msk.f32.vlgmr.msra.gmra.mxu1 %vm51_vm2, %v2023_v37  ;;  %2882 = vmatprep.subr.mxu0 %v3117_v2 }
 0x507   :  { %3026 = vmatpush3.msra.mxu1 %v3331_v25  ;;  %3033 = vmatprep.mubr.msk.f32.mxu1 %vm3118_vm1, %v3117_v2 }
 0x508   :  { %3027 = vmatprep.subr.mxu1 %v3117_v2 }
 0x509   :  { %3028 = vmatpush3.msra.mxu1 %v3338_v26 }
 0x50a   :  { %3029 = vmatprep.subr.mxu1 %v3117_v2 }
 0x50b   :  { %3030 = vmatpush3.msra.mxu1 %v3347_v27 }
 0x50c   :  { %3031 = vmatprep.subr.mxu1 %v3117_v2 }
 0x50d   :  { %3032 = vmatpush3.msra.mxu1 %v3354_v28 }
 0x50e   :  { %3047 = vmatprep.subr.mxu1 %v3117_v2 }
 0x5be   :  { %v1027_v0 = vpop.f32.mrf.mxu0 }
 0x5bf   :  { %v1101_v3 = vadd.f32 %v3397_v48, %v1027_v0 }
 0x5c0   :  { %v2848_v5 = vpop.f32.mrf.mxu0 }
 0x5c1   :  { %v1104_v12 = vadd.f32 %v3363_v30, %v1101_v3 }
 0x5c3   :  { %3075 = vtanh.f32 %v1104_v12 }
 0x5c6   :  { %v3537_v38 = vpop.f32.mrf.mxu1 }
 0x5c8   :  { %v3013_v39 = vpop.f32.mrf.mxu1 }
 0x5d0   :  { %v3076_v41 = vpop.eup %3075 }
 0x5d1   :  { %1106 = vst.msk [vmem:[#allocation2 + $0xc] sm:$0x3] %vm26_vm0, %v3076_v41  ;;  %2869 = vmatmul.mubr.msk.f32.vlgmr.msra.gmra.mxu0 %vm51_vm2, %v3076_v41 }
 0x5d2   :  { %2883 = vmatpush3.msra.mxu0 %v3542_v40  ;;  %2890 = vmatprep.mubr.msk.f32.mxu0 %vm3118_vm1, %v3117_v2 }
 0x5d3   :  { %2884 = vmatprep.subr.mxu0 %v3117_v2 }
 0x5d4   :  { %2885 = vmatpush3.msra.mxu0 %v3549_v42 }
 0x5d5   :  { %2886 = vmatprep.subr.mxu0 %v3117_v2 }
 0x5d6   :  { %2887 = vmatpush3.msra.mxu0 %v3558_v43 }
 0x5d7   :  { %2888 = vmatprep.subr.mxu0 %v3117_v2 }
 0x5d8   :  { %2889 = vmatpush3.msra.mxu0 %v3565_v44  ;;  %v2173_v45 = vld [vmem:[#allocation2 + $0xc] sm:$0x3] }
 0x5d9   :  { %2891 = vmatmul.mubr.f32.vlgmr.msra.gmra.mxu0 %v3117_v2  ;;  %3034 = vmatmul.mubr.msk.f32.vlgmr.msra.gmra.mxu1 %vm51_vm2, %v2173_v45 }
 0x5da   :  { %2904 = vmatprep.subr.mxu0 %v3117_v2  ;;  %3048 = vmatpush3.msra.mxu1 %v3331_v25 }
 0x5db   :  { %2905 = vmatpush3.msra.mxu0 %v3542_v40  ;;  %3049 = vmatprep.subr.mxu1 %v3117_v2 }
 0x5dc   :  { %2906 = vmatprep.subr.mxu0 %v3117_v2  ;;  %3050 = vmatpush3.msra.mxu1 %v3338_v26 }
 0x5dd   :  { %2907 = vmatpush3.msra.mxu0 %v3549_v42  ;;  %3051 = vmatprep.subr.mxu1 %v3117_v2 }
 0x5de   :  { %2908 = vmatprep.subr.mxu0 %v3117_v2  ;;  %3052 = vmatpush3.msra.mxu1 %v3347_v27 }
 0x5df   :  { %2909 = vmatpush3.msra.mxu0 %v3558_v43  ;;  %2912 = vmatprep.mubr.msk.f32.mxu0 %vm3118_vm1, %v3117_v2 }
 0x5e0   :  { %2910 = vmatprep.subr.mxu0 %v3117_v2  ;;  %3053 = vmatprep.subr.mxu1 %v3117_v2 }
 0x5e1   :  { %2911 = vmatpush3.msra.mxu0 %v3565_v44  ;;  %3054 = vmatpush3.msra.mxu1 %v3354_v28 }
 0x5e2   :  { %3055 = vmatprep.mubr.msk.f32.mxu1 %vm3118_vm1, %v3117_v2  ;;  %2926 = vmatprep.subr.mxu0 %v3117_v2 }
 0x691   :  { %v1178_v25 = vpop.f32.mrf.mxu0 }
 0x692   :  { %v1252_v26 = vadd.f32 %v3399_v50, %v1178_v25 }
 0x693   :  { %v2870_v27 = vpop.f32.mrf.mxu0 }
 0x694   :  { %v1255_v46 = vadd.f32 %v3363_v30, %v1252_v26 }
 0x696   :  { %3077 = vtanh.f32 %v1255_v46 }
 0x699   :  { %v1343_v48 = vpop.f32.mrf.mxu0  ;;  %v3599_v49 = vpop.f32.mrf.mxu1 }
 0x69a   :  { %v1417_v28 = vadd.f32 %v3402_v56, %v1343_v48 }
 0x69b   :  { %v2892_v51 = vpop.f32.mrf.mxu0  ;;  %v3035_v52 = vpop.f32.mrf.mxu1 }
 0x69c   :  { %v1420_v53 = vadd.f32 %v3597_v47, %v1417_v28 }
 0x69e   :  { %3079 = vtanh.f32 %v1420_v53 }
 0x6a3   :  { %v3078_v50 = vpop.eup %3077 }
 0x6a4   :  { %1257 = vst.msk [vmem:[#allocation2 + $0xe] sm:$0x3] %vm26_vm0, %v3078_v50 }
 0x6ab   :  { %v3080_v30 = vpop.eup %3079  ;;  %v2323_v54 = vld [vmem:[#allocation2 + $0xe] sm:$0x3] }
 0x6ac   :  { %1422 = vst.msk [vmem:[#allocation2] sm:$0x3] %vm26_vm0, %v3080_v30  ;;  %2913 = vmatmul.mubr.msk.f32.vlgmr.msra.gmra.mxu0 %vm51_vm2, %v3080_v30  ;;  %3056 = vmatmul.mubr.msk.f32.vlgmr.msra.gmra.mxu1 %vm51_vm2, %v2323_v54 }
 0x6ad   :  { %2927 = vmatpush3.msra.mxu0 %v3542_v40  ;;  %2934 = vmatprep.mubr.msk.f32.mxu0 %vm3118_vm1, %v3117_v2 }
 0x6ae   :  { %2928 = vmatprep.subr.mxu0 %v3117_v2 }
 0x6af   :  { %2929 = vmatpush3.msra.mxu0 %v3549_v42 }
 0x6b0   :  { %2930 = vmatprep.subr.mxu0 %v3117_v2 }
 0x6b1   :  { %2931 = vmatpush3.msra.mxu0 %v3558_v43 }
 0x6b2   :  { %2932 = vmatprep.subr.mxu0 %v3117_v2 }
 0x6b3   :  { %2933 = vmatpush3.msra.mxu0 %v3565_v44  ;;  %v2473_v55 = vld [vmem:[#allocation2] sm:$0x3] }
 0x6b4   :  { %2948 = vmatprep.subr.mxu0 %v3117_v2  ;;  %2481 = vst.msk [vmem:[#allocation3] sm:$0x3] %vm26_vm0, %v2473_v55 }
 0x76c   :  { %v1493_v56 = vpop.f32.mrf.mxu0  ;;  %v3618_v57 = vpop.f32.mrf.mxu1 }
 0x76d   :  { %v1567_v58 = vadd.f32 %v3429_v1, %v1493_v56 }
 0x76e   :  { %v2914_v59 = vpop.f32.mrf.mxu0  ;;  %v3057_v60 = vpop.f32.mrf.mxu1 }
 0x76f   :  { %v1570_v61 = vadd.f32 %v3597_v47, %v1567_v58 }
 0x771   :  { %3081 = vtanh.f32 %v1570_v61 }
 0x77e   :  { %v3082_v62 = vpop.eup %3081 }
 0x77f   :  { %1572 = vst.msk [vmem:[#allocation2 + $0x2] sm:$0x3] %vm26_vm0, %v3082_v62  ;;  %2935 = vmatmul.mubr.msk.f32.vlgmr.msra.gmra.mxu0 %vm51_vm2, %v3082_v62 }
 0x780   :  { %2949 = vmatpush3.msra.mxu0 %v3542_v40  ;;  %2956 = vmatprep.mubr.msk.f32.mxu0 %vm3118_vm1, %v3117_v2 }
 0x781   :  { %2950 = vmatprep.subr.mxu0 %v3117_v2 }
 0x782   :  { %2951 = vmatpush3.msra.mxu0 %v3549_v42 }
 0x783   :  { %2952 = vmatprep.subr.mxu0 %v3117_v2 }
 0x784   :  { %2953 = vmatpush3.msra.mxu0 %v3558_v43 }
 0x785   :  { %2954 = vmatprep.subr.mxu0 %v3117_v2 }
 0x786   :  { %2955 = vmatpush3.msra.mxu0 %v3565_v44  ;;  %v2474_v63 = vld [vmem:[#allocation2 + $0x2] sm:$0x3] }
 0x787   :  { %2970 = vmatprep.subr.mxu0 %v3117_v2  ;;  %2482 = vst.msk [vmem:[#allocation3 + $0x2] sm:$0x3] %vm26_vm0, %v2474_v63 }
 0x83f   :  { %v1643_v1 = vpop.f32.mrf.mxu0 }
 0x840   :  { %v1717_v4 = vadd.f32 %v3456_v13, %v1643_v1 }
 0x841   :  { %v2936_v6 = vpop.f32.mrf.mxu0 }
 0x842   :  { %v1720_v7 = vadd.f32 %v3597_v47, %v1717_v4 }
 0x844   :  { %3083 = vtanh.f32 %v1720_v7 }
 0x851   :  { %v3084_v8 = vpop.eup %3083 }
 0x852   :  { %1722 = vst.msk [vmem:[#allocation2 + $0x4] sm:$0x3] %vm26_vm0, %v3084_v8  ;;  %2957 = vmatmul.mubr.msk.f32.vlgmr.msra.gmra.mxu0 %vm51_vm2, %v3084_v8 }
 0x853   :  { %2971 = vmatpush3.msra.mxu0 %v3542_v40  ;;  %2978 = vmatprep.mubr.msk.f32.mxu0 %vm3118_vm1, %v3117_v2 }
 0x854   :  { %2972 = vmatprep.subr.mxu0 %v3117_v2 }
 0x855   :  { %2973 = vmatpush3.msra.mxu0 %v3549_v42 }
 0x856   :  { %2974 = vmatprep.subr.mxu0 %v3117_v2 }
 0x857   :  { %2975 = vmatpush3.msra.mxu0 %v3558_v43 }
 0x858   :  { %2976 = vmatprep.subr.mxu0 %v3117_v2 }
 0x859   :  { %2977 = vmatpush3.msra.mxu0 %v3565_v44  ;;  %v2475_v9 = vld [vmem:[#allocation2 + $0x4] sm:$0x3] }
 0x85a   :  { %2992 = vmatprep.subr.mxu0 %v3117_v2  ;;  %2483 = vst.msk [vmem:[#allocation3 + $0x4] sm:$0x3] %vm26_vm0, %v2475_v9 }
 0x912   :  { %v1793_v10 = vpop.f32.mrf.mxu0 }
 0x913   :  { %v1867_v11 = vadd.f32 %v3483_v21, %v1793_v10 }
 0x914   :  { %v2958_v13 = vpop.f32.mrf.mxu0 }
 0x915   :  { %v1870_v14 = vadd.f32 %v3597_v47, %v1867_v11 }
 0x917   :  { %3085 = vtanh.f32 %v1870_v14 }
 0x924   :  { %v3086_v15 = vpop.eup %3085 }
 0x925   :  { %1872 = vst.msk [vmem:[#allocation2 + $0x6] sm:$0x3] %vm26_vm0, %v3086_v15  ;;  %2979 = vmatmul.mubr.msk.f32.vlgmr.msra.gmra.mxu0 %vm51_vm2, %v3086_v15 }
 0x926   :  { %2993 = vmatpush3.msra.mxu0 %v3542_v40  ;;  %3000 = vmatprep.mubr.msk.f32.mxu0 %vm3118_vm1, %v3117_v2 }
 0x927   :  { %2994 = vmatprep.subr.mxu0 %v3117_v2 }
 0x928   :  { %2995 = vmatpush3.msra.mxu0 %v3549_v42 }
 0x929   :  { %2996 = vmatprep.subr.mxu0 %v3117_v2 }
 0x92a   :  { %2997 = vmatpush3.msra.mxu0 %v3558_v43 }
 0x92b   :  { %2998 = vmatprep.subr.mxu0 %v3117_v2 }
 0x92c   :  { %2999 = vmatpush3.msra.mxu0 %v3565_v44  ;;  %v2476_v16 = vld [vmem:[#allocation2 + $0x6] sm:$0x3] }
 0x92d   :  { %3014 = vmatprep.subr.mxu0 %v3117_v2  ;;  %2484 = vst.msk [vmem:[#allocation3 + $0x6] sm:$0x3] %vm26_vm0, %v2476_v16 }
 0x9e5   :  { %v1943_v17 = vpop.f32.mrf.mxu0 }
 0x9e6   :  { %v2017_v18 = vadd.f32 %v3510_v34, %v1943_v17 }
 0x9e7   :  { %v2980_v19 = vpop.f32.mrf.mxu0 }
 0x9e8   :  { %v2020_v20 = vadd.f32 %v3597_v47, %v2017_v18 }
 0x9ea   :  { %3087 = vtanh.f32 %v2020_v20 }
 0x9f7   :  { %v3088_v21 = vpop.eup %3087 }
 0x9f8   :  { %2022 = vst.msk [vmem:[#allocation2 + $0x8] sm:$0x3] %vm26_vm0, %v3088_v21  ;;  %3001 = vmatmul.mubr.msk.f32.vlgmr.msra.gmra.mxu0 %vm51_vm2, %v3088_v21 }
 0x9f9   :  { %3015 = vmatpush3.msra.mxu0 %v3542_v40  ;;  %3022 = vmatprep.mubr.msk.f32.mxu0 %vm3118_vm1, %v3117_v2 }
 0x9fa   :  { %3016 = vmatprep.subr.mxu0 %v3117_v2 }
 0x9fb   :  { %3017 = vmatpush3.msra.mxu0 %v3549_v42 }
 0x9fc   :  { %3018 = vmatprep.subr.mxu0 %v3117_v2 }
 0x9fd   :  { %3019 = vmatpush3.msra.mxu0 %v3558_v43 }
 0x9fe   :  { %3020 = vmatprep.subr.mxu0 %v3117_v2 }
 0x9ff   :  { %3021 = vmatpush3.msra.mxu0 %v3565_v44  ;;  %v2477_v22 = vld [vmem:[#allocation2 + $0x8] sm:$0x3] }
 0xa00   :  { %3036 = vmatprep.subr.mxu0 %v3117_v2  ;;  %2485 = vst.msk [vmem:[#allocation3 + $0x8] sm:$0x3] %vm26_vm0, %v2477_v22 }
 0xab8   :  { %v2093_v23 = vpop.f32.mrf.mxu0 }
 0xab9   :  { %v2167_v24 = vadd.f32 %v3537_v38, %v2093_v23 }
 0xaba   :  { %v3002_v29 = vpop.f32.mrf.mxu0 }
 0xabb   :  { %v2170_v31 = vadd.f32 %v3597_v47, %v2167_v24 }
 0xabd   :  { %3089 = vtanh.f32 %v2170_v31 }
 0xaca   :  { %v3090_v32 = vpop.eup %3089 }
 0xacb   :  { %2172 = vst.msk [vmem:[#allocation2 + $0xa] sm:$0x3] %vm26_vm0, %v3090_v32  ;;  %3023 = vmatmul.mubr.msk.f32.vlgmr.msra.gmra.mxu0 %vm51_vm2, %v3090_v32 }
 0xacc   :  { %3037 = vmatpush3.msra.mxu0 %v3542_v40  ;;  %3044 = vmatprep.mubr.msk.f32.mxu0 %vm3118_vm1, %v3117_v2 }
 0xacd   :  { %3038 = vmatprep.subr.mxu0 %v3117_v2 }
 0xace   :  { %3039 = vmatpush3.msra.mxu0 %v3549_v42 }
 0xacf   :  { %3040 = vmatprep.subr.mxu0 %v3117_v2 }
 0xad0   :  { %3041 = vmatpush3.msra.mxu0 %v3558_v43 }
 0xad1   :  { %3042 = vmatprep.subr.mxu0 %v3117_v2 }
 0xad2   :  { %3043 = vmatpush3.msra.mxu0 %v3565_v44  ;;  %v2478_v33 = vld [vmem:[#allocation2 + $0xa] sm:$0x3] }
 0xad3   :  { %2486 = vst.msk [vmem:[#allocation3 + $0xa] sm:$0x3] %vm26_vm0, %v2478_v33 }
 0xb8b   :  { %v2243_v34 = vpop.f32.mrf.mxu0 }
 0xb8c   :  { %v2317_v35 = vadd.f32 %v3599_v49, %v2243_v34 }
 0xb8d   :  { %v3024_v36 = vpop.f32.mrf.mxu0 }
 0xb8e   :  { %v2320_v37 = vadd.f32 %v3597_v47, %v2317_v35 }
 0xb90   :  { %3091 = vtanh.f32 %v2320_v37 }
 0xb9d   :  { %v3092_v0 = vpop.eup %3091 }
 0xb9e   :  { %2322 = vst.msk [vmem:[#allocation2 + $0xc] sm:$0x3] %vm26_vm0, %v3092_v0  ;;  %3045 = vmatmul.mubr.msk.f32.vlgmr.msra.gmra.mxu0 %vm51_vm2, %v3092_v0 }
 0xba5   :  { %v2479_v3 = vld [vmem:[#allocation2 + $0xc] sm:$0x3] }
 0xba6   :  { %2487 = vst.msk [vmem:[#allocation3 + $0xc] sm:$0x3] %vm26_vm0, %v2479_v3 }
 0xc5e   :  { %v2393_v2 = vpop.f32.mrf.mxu0 }
 0xc5f   :  { %v2467_v5 = vadd.f32 %v3618_v57, %v2393_v2 }
 0xc60   :  { %v3046_v12 = vpop.f32.mrf.mxu0 }
 0xc61   :  { %v2470_v38 = vadd.f32 %v3597_v47, %v2467_v5 }
 0xc63   :  { %3093 = vtanh.f32 %v2470_v38 }
 0xc70   :  { %v3094_v39 = vpop.eup %3093 }
 0xc71   :  { %2472 = vst.msk [vmem:[#allocation2 + $0xe] sm:$0x3] %vm26_vm0, %v3094_v39 }
 0xc78   :  { %v2480_v40 = vld [vmem:[#allocation2 + $0xe] sm:$0x3] }
 0xc79   :  { %2488 = vst.msk [vmem:[#allocation3 + $0xe] sm:$0x3] %vm26_vm0, %v2480_v40 }
 0xc7a   :  { %3106 = shalt.err (!%p3103_p4)
}
 0xc7b   :  { %s3120_s14 = smov 32   ;;  %s3121_s15 = smov 2  }
 0xc7c   :  { %2500 = dma.vmem_to_hbm [thread:$0]  %s2495_s12, 256, %s3710_s4, [#allocation4], %s3120_s14, %s3120_s14, %s3121_s15  }
 0xc7d   :  { %3115 = dma.done.wait [#allocation4], 256  }
 0xc7e   :  { %3116 = vsyncadd [#allocation4], 4294967040 }
 0xc7f   :  { %2504 = vsyncpa [#allocation4], 1 }

</bundles_post_ra>
